<compile_context>
chip_gen: v6e
topology: v6e:2x2x1
jax: 0.10.0
libtpu: 0.0.40
codegen_flags: <defaults>
</compile_context>

<pallas_src>
import jax
import jax.numpy as jnp
from jax import lax
from jax.experimental import pallas as pl
from jax.experimental.pallas import tpu as pltpu

# ----------------------------- model sizes (small, synthetic) -----------------------------
BATCH = 2
SEQ_LEN = 8
EMBED_DIM = 32      # args.embedding_dim (logical) — NOT lane-padded (contraction dim)
HIDDEN = 32         # args.hidden_size   (logical)
N_ITEMS = 200
N_HOUR, N_MIN, N_SEC = 24, 60, 60

# TPU-friendly padded sizes
B_P = 8                                               # batch -> 8-sublane tile
H_P = 128                                             # each GRU gate on a 128-lane boundary
TILE_N = 128                                          # score-head item tile (multiple of 128)
N_ITEMS_P = ((N_ITEMS + TILE_N - 1) // TILE_N) * TILE_N


# ----------------------------- fused STAR kernel -------------------------------------------
def star_fused_kernel(emb_ref, ha_ref, ma_ref, sa_ref, hb_ref, mb_ref, sb_ref,
                      wih_ref, whh_ref, bih_ref, bhh_ref,
                      wa_ref, wb_ref, w5_ref, b5_ref, emt_ref,
                      out_ref, gi_scr, final_scr):
    # emb_ref : (L*B_P, D)  bf16, rows ordered time-major (t*B_P + b)
    # ha..sb  : (B_P, D)    bf16 temporal embeddings
    # wih     : (D, 3*H_P) bf16   whh: (H_P, 3*H_P) bf16   bih/bhh: (1, 3*H_P) f32
    # wa/wb   : (D, H_P) bf16     w5: (6*H_P, D) bf16      b5: (1, D) f32
    # emt     : (TILE_N, D) bf16 item-embedding tile (single table, no transposed copy)
    # out     : (B_P, TILE_N) f32 score tile
    # gi_scr  : (L*B_P, 3*H_P) f32 scratch (hoisted GRU input projection)
    # final_scr: (B_P, D) f32 scratch — final hidden, carried across item tiles
    f32 = jnp.float32
    B = ha_ref.shape[0]
    LB = emb_ref.shape[0]
    L = LB // B
    H = whh_ref.shape[0]

    # ---------------- front end (Modules 2..5): run once, on the first item tile ----------
    @pl.when(pl.program_id(0) == 0)
    def _front():
        # ---- Module_2 (GRU): input projection hoisted out of the recurrence ----
        gi_scr[...] = (jnp.dot(emb_ref[...], wih_ref[...], preferred_element_type=f32)
                       + bih_ref[...])

        whh = whh_ref[...]
        bhh_b = jnp.broadcast_to(bhh_ref[...], (B, 3 * H))   # hoisted: no CSE inside loop

        # ---- Module_3 (independent of the GRU): temporal a/b embeddings ----
        a_sum = ha_ref[...].astype(f32) + ma_ref[...].astype(f32) + sa_ref[...].astype(f32)
        b_sum = hb_ref[...].astype(f32) + mb_ref[...].astype(f32) + sb_ref[...].astype(f32)
        a_e = jnp.tanh(jnp.dot(a_sum.astype(wa_ref.dtype), wa_ref[...],
                               preferred_element_type=f32))          # (B, H_P)
        b_e = jnp.tanh(jnp.dot(b_sum.astype(wb_ref.dtype), wb_ref[...],
                               preferred_element_type=f32))          # (B, H_P)

        h = jnp.zeros((B, H), f32)        # recurrent state lives in vregs
        hs = []
        for t in range(L):                # static unroll; only gh on the serial path
            gi = gi_scr[t * B:(t + 1) * B, :]           # whole-tile aligned read (B_P=8)
            gh = jnp.dot(h.astype(whh.dtype), whh, preferred_element_type=f32) + bhh_b
            r = jax.nn.sigmoid(gi[:, 0:H] + gh[:, 0:H])
            z = jax.nn.sigmoid(gi[:, H:2 * H] + gh[:, H:2 * H])
            n = jnp.tanh(gi[:, 2 * H:3 * H] + r * gh[:, 2 * H:3 * H])
            h = (1.0 - z) * n + z * h
            hs.append(h)
        h_last = h

        # ---- Module_4: time-aware attention, fully unrolled over the static L ----
        # History stays in (B,H)/(B,1) vregs — no scratch store/reload, no (L,B,H) stack.
        sa_l = [jnp.sum(h_t * a_e, axis=-1, keepdims=True) for h_t in hs]   # L x (B,1)
        sb_l = [jnp.sum(h_t * b_e, axis=-1, keepdims=True) for h_t in hs]

        def softmax_list(xs):
            m = xs[0]
            for x in xs[1:]:
                m = jnp.maximum(m, x)
            es = [jnp.exp(x - m) for x in xs]
            den = es[0]
            for e in es[1:]:
                den = den + e
            return [e / den for e in es]

        aa = softmax_list(sa_l)
        ab = softmax_list(sb_l)
        c_a = aa[0] * hs[0]
        c_b = ab[0] * hs[0]
        h_sum = hs[0]
        for t in range(1, L):
            c_a = c_a + aa[t] * hs[t]
            c_b = c_b + ab[t] * hs[t]
            h_sum = h_sum + hs[t]
        h_mean = h_sum * (1.0 / L)

        # ---- Module_5: fuse the 6 features with ONE 6H-deep matmul + tanh ----
        feats = jnp.concatenate([h_last, c_a, c_b, a_e, b_e, h_mean], axis=-1)   # (B, 6*H_P)
        fused = jnp.dot(feats.astype(w5_ref.dtype), w5_ref[...],
                        preferred_element_type=f32) + b5_ref[...]                # (B, D)
        final_scr[...] = jnp.tanh(fused)

    # ---------------- Module_1_6.get_scores: tiled over the item axis ----------------
    # RHS contraction on dim 1 (NT matmul) — no transposed copy of the item table.
    emt = emt_ref[...]                                            # (TILE_N, D) bf16
    out_ref[...] = lax.dot_general(
        final_scr[...].astype(emt.dtype), emt,
        dimension_numbers=(((1,), (1,)), ((), ())),
        preferred_element_type=f32).astype(out_ref.dtype)


def run_star_fused(emb_flat, ha, ma, sa, hb, mb, sb,
                   w_ih, w_hh, b_ih, b_hh, w_a, w_b, w5, b5, item_emb):
    B = ha.shape[0]                      # B_P
    LB = emb_flat.shape[0]
    D = item_emb.shape[1]
    n_tiles = item_emb.shape[0] // TILE_N

    def full_spec(x):
        nd = x.ndim
        return pl.BlockSpec(x.shape, lambda i, _n=nd: (0,) * _n)   # constant block index

    plain = (emb_flat, ha, ma, sa, hb, mb, sb,
             w_ih, w_hh, b_ih, b_hh, w_a, w_b, w5, b5)

    return pl.pallas_call(
        star_fused_kernel,
        out_shape=jax.ShapeDtypeStruct((B, item_emb.shape[0]), jnp.float32),
        grid=(n_tiles,),
        in_specs=[full_spec(x) for x in plain]
                 + [pl.BlockSpec((TILE_N, D), lambda i: (i, 0))],
        out_specs=pl.BlockSpec((B, TILE_N), lambda i: (0, i)),
        scratch_shapes=[
            pltpu.VMEM((LB, 3 * H_P), jnp.float32),    # hoisted GRU input projection
            pltpu.VMEM((B, D), jnp.float32),           # final hidden, carried across tiles
        ],
        compiler_params=pltpu.CompilerParams(
            # "arbitrary": final_scr is computed at item-tile 0 and reused by later tiles.
            dimension_semantics=("arbitrary",),
            vmem_limit_bytes=32 * 1024 * 1024,
        ),
    )(*plain, item_emb)


# ----------------------------- parameter init (deterministic, logical sizes) ---------------
def init_params(key):
    ks = jax.random.split(key, 15)
    s = 0.05

    def nrm(k, shape):
        return (s * jax.random.normal(k, shape)).astype(jnp.float32)

    return dict(
        item_emb=nrm(ks[0], (N_ITEMS, EMBED_DIM)),
        hour_a=nrm(ks[1], (N_HOUR, EMBED_DIM)),
        min_a=nrm(ks[2], (N_MIN, EMBED_DIM)),
        sec_a=nrm(ks[3], (N_SEC, EMBED_DIM)),
        hour_b=nrm(ks[4], (N_HOUR, EMBED_DIM)),
        min_b=nrm(ks[5], (N_MIN, EMBED_DIM)),
        sec_b=nrm(ks[6], (N_SEC, EMBED_DIM)),
        w_ih=nrm(ks[7], (EMBED_DIM, 3 * HIDDEN)),
        w_hh=nrm(ks[8], (HIDDEN, 3 * HIDDEN)),
        b_ih=nrm(ks[9], (1, 3 * HIDDEN)),
        b_hh=nrm(ks[10], (1, 3 * HIDDEN)),
        w_a=nrm(ks[11], (EMBED_DIM, HIDDEN)),
        w_b=nrm(ks[12], (EMBED_DIM, HIDDEN)),
        w5=nrm(ks[13], (6, HIDDEN, EMBED_DIM)),
        b5=nrm(ks[14], (1, EMBED_DIM)),
    )


# ----------------------------- padding (exact: zero pad keeps math identical) --------------
def pad_params(p):
    """Pad only the output/gate lane dims; keep the contraction dim D at its logical 32."""
    bf16, f32 = jnp.bfloat16, jnp.float32

    def pad2(x, rows, cols, dtype):
        out = jnp.zeros((rows, cols), dtype)
        return out.at[:x.shape[0], :x.shape[1]].set(x.astype(dtype))

    def pad_gates(x, rows, dtype):
        # x: (din, 3*HIDDEN) laid out [r|z|n]; each gate starts on a 128-lane boundary.
        out = jnp.zeros((rows, 3 * H_P), dtype)
        for g in range(3):
            out = out.at[:x.shape[0], g * H_P:g * H_P + HIDDEN].set(
                x[:, g * HIDDEN:(g + 1) * HIDDEN].astype(dtype))
        return out

    w5 = jnp.zeros((6 * H_P, EMBED_DIM), bf16)
    for i in range(6):
        w5 = w5.at[i * H_P:i * H_P + HIDDEN, :].set(p["w5"][i].astype(bf16))

    return dict(
        # item axis padded to a multiple of TILE_N; embedding dim left at 32 (un-padded).
        item_emb=pad2(p["item_emb"], N_ITEMS_P, EMBED_DIM, bf16),
        hour_a=p["hour_a"].astype(bf16),
        min_a=p["min_a"].astype(bf16),
        sec_a=p["sec_a"].astype(bf16),
        hour_b=p["hour_b"].astype(bf16),
        min_b=p["min_b"].astype(bf16),
        sec_b=p["sec_b"].astype(bf16),
        w_ih=pad_gates(p["w_ih"], EMBED_DIM, bf16),
        w_hh=pad_gates(p["w_hh"], H_P, bf16),
        b_ih=pad_gates(p["b_ih"], 1, f32),
        b_hh=pad_gates(p["b_hh"], 1, f32),
        w_a=pad2(p["w_a"], EMBED_DIM, H_P, bf16),
        w_b=pad2(p["w_b"], EMBED_DIM, H_P, bf16),
        w5=w5,
        b5=p["b5"].astype(f32),
    )


# ----------------------------- full STAR forward -------------------------------------------
@jax.jit
def star_forward(pp, item_sequence, h_a_o, m_a_o, s_a_o, h_b_o, m_b_o, s_b_o):
    B, L = item_sequence.shape
    pad_b = B_P - B
    seq_p = jnp.pad(item_sequence, ((0, pad_b), (0, 0)))   # padded sessions use item 0
    pv = lambda v: jnp.pad(v, (0, pad_b))

    # Module_1_6: embedding lookups (gathers kept as XLA glue; dropout = identity in eval).
    # Item embeddings flattened time-major so the kernel reads whole (B_P, ·) slabs per step.
    emb_flat = jnp.take(pp["item_emb"], seq_p.T.reshape(-1), axis=0)    # (L*B_P, D)

    ha = jnp.take(pp["hour_a"], pv(h_a_o), axis=0)
    ma = jnp.take(pp["min_a"], pv(m_a_o), axis=0)
    sa = jnp.take(pp["sec_a"], pv(s_a_o), axis=0)
    hb = jnp.take(pp["hour_b"], pv(h_b_o), axis=0)
    mb = jnp.take(pp["min_b"], pv(m_b_o), axis=0)
    sb = jnp.take(pp["sec_b"], pv(s_b_o), axis=0)

    # Modules 2+3+4+5 + item-tiled score head fused into ONE Pallas kernel.
    scores_p = run_star_fused(emb_flat, ha, ma, sa, hb, mb, sb,
                              pp["w_ih"], pp["w_hh"], pp["b_ih"], pp["b_hh"],
                              pp["w_a"], pp["w_b"], pp["w5"], pp["b5"],
                              pp["item_emb"])                # (B_P, N_ITEMS_P)
    return scores_p[:B, :N_ITEMS]


# ----------------------------- main ---------------------------------------------------------
if __name__ == "__main__":
    key = jax.random.PRNGKey(0)
    k_par, k_seq, k_ha, k_ma, k_sa, k_hb, k_mb, k_sb = jax.random.split(key, 8)

    params = init_params(k_par)
    padded_params = pad_params(params)

    item_sequence = jax.random.randint(k_seq, (BATCH, SEQ_LEN), 0, N_ITEMS, dtype=jnp.int32)
    h_a_o = jax.random.randint(k_ha, (BATCH,), 0, N_HOUR, dtype=jnp.int32)
    m_a_o = jax.random.randint(k_ma, (BATCH,), 0, N_MIN, dtype=jnp.int32)
    s_a_o = jax.random.randint(k_sa, (BATCH,), 0, N_SEC, dtype=jnp.int32)
    h_b_o = jax.random.randint(k_hb, (BATCH,), 0, N_HOUR, dtype=jnp.int32)
    m_b_o = jax.random.randint(k_mb, (BATCH,), 0, N_MIN, dtype=jnp.int32)
    s_b_o = jax.random.randint(k_sb, (BATCH,), 0, N_SEC, dtype=jnp.int32)

    y = star_forward(padded_params, item_sequence,
                     h_a_o, m_a_o, s_a_o, h_b_o, m_b_o, s_b_o)
    y = jax.block_until_ready(y)

    assert y.shape == (BATCH, N_ITEMS), y.shape
    assert bool(jnp.all(jnp.isfinite(y)))
    print("KERNEL_OK")
</pallas_src>

<mosaic_0001>
module attributes {stable_mosaic.version = 11 : i64} {
  func.func @star_fused_kernel(%arg0: i32, %arg1: memref<64x32xbf16, #tpu.memory_space<vmem>>, %arg2: memref<8x32xbf16, #tpu.memory_space<vmem>>, %arg3: memref<8x32xbf16, #tpu.memory_space<vmem>>, %arg4: memref<8x32xbf16, #tpu.memory_space<vmem>>, %arg5: memref<8x32xbf16, #tpu.memory_space<vmem>>, %arg6: memref<8x32xbf16, #tpu.memory_space<vmem>>, %arg7: memref<8x32xbf16, #tpu.memory_space<vmem>>, %arg8: memref<32x384xbf16, #tpu.memory_space<vmem>>, %arg9: memref<128x384xbf16, #tpu.memory_space<vmem>>, %arg10: memref<1x384xf32, #tpu.memory_space<vmem>>, %arg11: memref<1x384xf32, #tpu.memory_space<vmem>>, %arg12: memref<32x128xbf16, #tpu.memory_space<vmem>>, %arg13: memref<32x128xbf16, #tpu.memory_space<vmem>>, %arg14: memref<768x32xbf16, #tpu.memory_space<vmem>>, %arg15: memref<1x32xf32, #tpu.memory_space<vmem>>, %arg16: memref<128x32xbf16, #tpu.memory_space<vmem>>, %arg17: memref<8x128xf32, #tpu.memory_space<vmem>>, %arg18: memref<64x384xf32, #tpu.memory_space<vmem>>, %arg19: memref<8x32xf32, #tpu.memory_space<vmem>>) attributes {dimension_semantics = [#tpu.dimension_semantics<arbitrary>], iteration_bounds = array<i64: 2>, scalar_prefetch = 0 : i64, scratch_operands = 2 : i64, tpu.core_type = #tpu.core_type<tc>, window_params = [{pipeline_mode = #tpu.pipeline_mode<synchronous>, transform_indices = @transform_0, window_bounds = array<i64: 64, 32>}, {pipeline_mode = #tpu.pipeline_mode<synchronous>, transform_indices = @transform_1, window_bounds = array<i64: 8, 32>}, {pipeline_mode = #tpu.pipeline_mode<synchronous>, transform_indices = @transform_2, window_bounds = array<i64: 8, 32>}, {pipeline_mode = #tpu.pipeline_mode<synchronous>, transform_indices = @transform_3, window_bounds = array<i64: 8, 32>}, {pipeline_mode = #tpu.pipeline_mode<synchronous>, transform_indices = @transform_4, window_bounds = array<i64: 8, 32>}, {pipeline_mode = #tpu.pipeline_mode<synchronous>, transform_indices = @transform_5, window_bounds = array<i64: 8, 32>}, {pipeline_mode = #tpu.pipeline_mode<synchronous>, transform_indices = @transform_6, window_bounds = array<i64: 8, 32>}, {pipeline_mode = #tpu.pipeline_mode<synchronous>, transform_indices = @transform_7, window_bounds = array<i64: 32, 384>}, {pipeline_mode = #tpu.pipeline_mode<synchronous>, transform_indices = @transform_8, window_bounds = array<i64: 128, 384>}, {pipeline_mode = #tpu.pipeline_mode<synchronous>, transform_indices = @transform_9, window_bounds = array<i64: 1, 384>}, {pipeline_mode = #tpu.pipeline_mode<synchronous>, transform_indices = @transform_10, window_bounds = array<i64: 1, 384>}, {pipeline_mode = #tpu.pipeline_mode<synchronous>, transform_indices = @transform_11, window_bounds = array<i64: 32, 128>}, {pipeline_mode = #tpu.pipeline_mode<synchronous>, transform_indices = @transform_12, window_bounds = array<i64: 32, 128>}, {pipeline_mode = #tpu.pipeline_mode<synchronous>, transform_indices = @transform_13, window_bounds = array<i64: 768, 32>}, {pipeline_mode = #tpu.pipeline_mode<synchronous>, transform_indices = @transform_14, window_bounds = array<i64: 1, 32>}, {transform_indices = @transform_15, window_bounds = array<i64: 128, 32>}, {transform_indices = @transform_16, window_bounds = array<i64: 8, 128>}]} {
    %c0_i32 = arith.constant 0 : i32
    %0 = arith.cmpi eq, %arg0, %c0_i32 : i32
    %1 = arith.extui %0 : i1 to i32
    %c0_i32_0 = arith.constant 0 : i32
    %2 = arith.cmpi ne, %1, %c0_i32_0 : i32
    scf.if %2 {
      %c0_6 = arith.constant 0 : index
      %c0_7 = arith.constant 0 : index
      %8 = vector.load %arg1[%c0_6, %c0_7] : memref<64x32xbf16, #tpu.memory_space<vmem>>, vector<64x32xbf16>
      %c0_8 = arith.constant 0 : index
      %c0_9 = arith.constant 0 : index
      %9 = vector.load %arg8[%c0_8, %c0_9] : memref<32x384xbf16, #tpu.memory_space<vmem>>, vector<32x384xbf16>
      %cst_10 = arith.constant dense<0.000000e+00> : vector<64x384xf32>
      %10 = tpu.matmul %8, %9, %cst_10 {dimension_numbers = #tpu.dot_dimension_numbers<[1], [0], [0], [1], [0, 0, 1, 1], [], []>} : vector<64x32xbf16>, vector<32x384xbf16>, vector<64x384xf32> -> vector<64x384xf32>
      %c0_11 = arith.constant 0 : index
      %c0_12 = arith.constant 0 : index
      %11 = vector.load %arg10[%c0_11, %c0_12] : memref<1x384xf32, #tpu.memory_space<vmem>>, vector<1x384xf32>
      %12 = vector.broadcast %11 : vector<1x384xf32> to vector<64x384xf32>
      %13 = arith.addf %10, %12 : vector<64x384xf32>
      %c0_13 = arith.constant 0 : index
      %c0_14 = arith.constant 0 : index
      %14 = vector.load %arg18[%c0_13, %c0_14] : memref<64x384xf32, #tpu.memory_space<vmem>>, vector<64x384xf32>
      tpu.vector_store %arg18[%c0_13, %c0_14], %13 {strides = array<i32>} : memref<64x384xf32, #tpu.memory_space<vmem>>, vector<64x384xf32>,
      %c0_15 = arith.constant 0 : index
      %c0_16 = arith.constant 0 : index
      %15 = vector.load %arg9[%c0_15, %c0_16] : memref<128x384xbf16, #tpu.memory_space<vmem>>, vector<128x384xbf16>
      %c0_17 = arith.constant 0 : index
      %c0_18 = arith.constant 0 : index
      %16 = vector.load %arg11[%c0_17, %c0_18] : memref<1x384xf32, #tpu.memory_space<vmem>>, vector<1x384xf32>
      %17 = vector.shape_cast %16 : vector<1x384xf32> to vector<1x384xf32>
      %18 = vector.broadcast %17 : vector<1x384xf32> to vector<8x384xf32>
      %c0_19 = arith.constant 0 : index
      %c0_20 = arith.constant 0 : index
      %19 = vector.load %arg2[%c0_19, %c0_20] : memref<8x32xbf16, #tpu.memory_space<vmem>>, vector<8x32xbf16>
      %20 = arith.extf %19 : vector<8x32xbf16> to vector<8x32xf32>
      %c0_21 = arith.constant 0 : index
      %c0_22 = arith.constant 0 : index
      %21 = vector.load %arg3[%c0_21, %c0_22] : memref<8x32xbf16, #tpu.memory_space<vmem>>, vector<8x32xbf16>
      %22 = arith.extf %21 : vector<8x32xbf16> to vector<8x32xf32>
      %23 = arith.addf %20, %22 : vector<8x32xf32>
      %c0_23 = arith.constant 0 : index
      %c0_24 = arith.constant 0 : index
      %24 = vector.load %arg4[%c0_23, %c0_24] : memref<8x32xbf16, #tpu.memory_space<vmem>>, vector<8x32xbf16>
      %25 = arith.extf %24 : vector<8x32xbf16> to vector<8x32xf32>
      %26 = arith.addf %23, %25 : vector<8x32xf32>
      %c0_25 = arith.constant 0 : index
      %c0_26 = arith.constant 0 : index
      %27 = vector.load %arg5[%c0_25, %c0_26] : memref<8x32xbf16, #tpu.memory_space<vmem>>, vector<8x32xbf16>
      %28 = arith.extf %27 : vector<8x32xbf16> to vector<8x32xf32>
      %c0_27 = arith.constant 0 : index
      %c0_28 = arith.constant 0 : index
      %29 = vector.load %arg6[%c0_27, %c0_28] : memref<8x32xbf16, #tpu.memory_space<vmem>>, vector<8x32xbf16>
      %30 = arith.extf %29 : vector<8x32xbf16> to vector<8x32xf32>
      %31 = arith.addf %28, %30 : vector<8x32xf32>
      %c0_29 = arith.constant 0 : index
      %c0_30 = arith.constant 0 : index
      %32 = vector.load %arg7[%c0_29, %c0_30] : memref<8x32xbf16, #tpu.memory_space<vmem>>, vector<8x32xbf16>
      %33 = arith.extf %32 : vector<8x32xbf16> to vector<8x32xf32>
      %34 = arith.addf %31, %33 : vector<8x32xf32>
      %35 = arith.truncf %26 : vector<8x32xf32> to vector<8x32xbf16>
      %c0_31 = arith.constant 0 : index
      %c0_32 = arith.constant 0 : index
      %36 = vector.load %arg12[%c0_31, %c0_32] : memref<32x128xbf16, #tpu.memory_space<vmem>>, vector<32x128xbf16>
      %cst_33 = arith.constant dense<0.000000e+00> : vector<8x128xf32>
      %37 = tpu.matmul %35, %36, %cst_33 {dimension_numbers = #tpu.dot_dimension_numbers<[1], [0], [0], [1], [0, 0, 1, 1], [], []>} : vector<8x32xbf16>, vector<32x128xbf16>, vector<8x128xf32> -> vector<8x128xf32>
      %38 = math.tanh %37 : vector<8x128xf32>
      %39 = arith.truncf %34 : vector<8x32xf32> to vector<8x32xbf16>
      %c0_34 = arith.constant 0 : index
      %c0_35 = arith.constant 0 : index
      %40 = vector.load %arg13[%c0_34, %c0_35] : memref<32x128xbf16, #tpu.memory_space<vmem>>, vector<32x128xbf16>
      %cst_36 = arith.constant dense<0.000000e+00> : vector<8x128xf32>
      %41 = tpu.matmul %39, %40, %cst_36 {dimension_numbers = #tpu.dot_dimension_numbers<[1], [0], [0], [1], [0, 0, 1, 1], [], []>} : vector<8x32xbf16>, vector<32x128xbf16>, vector<8x128xf32> -> vector<8x128xf32>
      %42 = math.tanh %41 : vector<8x128xf32>
      %cst_37 = arith.constant 0.000000e+00 : f32
      %43 = vector.broadcast %cst_37 : f32 to vector<8x128xf32>
      %c0_38 = arith.constant 0 : index
      %c0_39 = arith.constant 0 : index
      %44 = vector.load %arg18[%c0_38, %c0_39] : memref<64x384xf32, #tpu.memory_space<vmem>>, vector<8x384xf32>
      %45 = arith.truncf %43 : vector<8x128xf32> to vector<8x128xbf16>
      %cst_40 = arith.constant dense<0.000000e+00> : vector<8x384xf32>
      %46 = tpu.matmul %45, %15, %cst_40 {dimension_numbers = #tpu.dot_dimension_numbers<[1], [0], [0], [1], [0, 0, 1, 1], [], []>} : vector<8x128xbf16>, vector<128x384xbf16>, vector<8x384xf32> -> vector<8x384xf32>
      %47 = arith.addf %46, %18 : vector<8x384xf32>
      %48 = vector.extract_strided_slice %44 {offsets = [0, 0], sizes = [8, 128], strides = [1, 1]} : vector<8x384xf32> to vector<8x128xf32>
      %49 = vector.extract_strided_slice %47 {offsets = [0, 0], sizes = [8, 128], strides = [1, 1]} : vector<8x384xf32> to vector<8x128xf32>
      %50 = arith.addf %48, %49 : vector<8x128xf32>
      %51 = arith.negf %50 : vector<8x128xf32>
      %52 = math.exp %51 : vector<8x128xf32>
      %cst_41 = arith.constant 1.000000e+00 : f32
      %53 = vector.broadcast %cst_41 : f32 to vector<8x128xf32>
      %54 = arith.addf %53, %52 : vector<8x128xf32>
      %55 = arith.divf %53, %54 : vector<8x128xf32>
      %56 = vector.extract_strided_slice %44 {offsets = [0, 128], sizes = [8, 128], strides = [1, 1]} : vector<8x384xf32> to vector<8x128xf32>
      %57 = vector.extract_strided_slice %47 {offsets = [0, 128], sizes = [8, 128], strides = [1, 1]} : vector<8x384xf32> to vector<8x128xf32>
      %58 = arith.addf %56, %57 : vector<8x128xf32>
      %59 = arith.negf %58 : vector<8x128xf32>
      %60 = math.exp %59 : vector<8x128xf32>
      %cst_42 = arith.constant 1.000000e+00 : f32
      %61 = vector.broadcast %cst_42 : f32 to vector<8x128xf32>
      %62 = arith.addf %61, %60 : vector<8x128xf32>
      %63 = arith.divf %61, %62 : vector<8x128xf32>
      %64 = vector.extract_strided_slice %44 {offsets = [0, 256], sizes = [8, 128], strides = [1, 1]} : vector<8x384xf32> to vector<8x128xf32>
      %65 = vector.extract_strided_slice %47 {offsets = [0, 256], sizes = [8, 128], strides = [1, 1]} : vector<8x384xf32> to vector<8x128xf32>
      %66 = arith.mulf %55, %65 : vector<8x128xf32>
      %67 = arith.addf %64, %66 : vector<8x128xf32>
      %68 = math.tanh %67 : vector<8x128xf32>
      %cst_43 = arith.constant 1.000000e+00 : f32
      %69 = vector.broadcast %cst_43 : f32 to vector<8x128xf32>
      %70 = arith.subf %69, %63 : vector<8x128xf32>
      %71 = arith.mulf %70, %68 : vector<8x128xf32>
      %72 = arith.mulf %63, %43 : vector<8x128xf32>
      %73 = arith.addf %71, %72 : vector<8x128xf32>
      %c8 = arith.constant 8 : index
      %c0_44 = arith.constant 0 : index
      %74 = vector.load %arg18[%c8, %c0_44] : memref<64x384xf32, #tpu.memory_space<vmem>>, vector<8x384xf32>
      %75 = arith.truncf %73 : vector<8x128xf32> to vector<8x128xbf16>
      %cst_45 = arith.constant dense<0.000000e+00> : vector<8x384xf32>
      %76 = tpu.matmul %75, %15, %cst_45 {dimension_numbers = #tpu.dot_dimension_numbers<[1], [0], [0], [1], [0, 0, 1, 1], [], []>} : vector<8x128xbf16>, vector<128x384xbf16>, vector<8x384xf32> -> vector<8x384xf32>
      %77 = arith.addf %76, %18 : vector<8x384xf32>
      %78 = vector.extract_strided_slice %74 {offsets = [0, 0], sizes = [8, 128], strides = [1, 1]} : vector<8x384xf32> to vector<8x128xf32>
      %79 = vector.extract_strided_slice %77 {offsets = [0, 0], sizes = [8, 128], strides = [1, 1]} : vector<8x384xf32> to vector<8x128xf32>
      %80 = arith.addf %78, %79 : vector<8x128xf32>
      %81 = arith.negf %80 : vector<8x128xf32>
      %82 = math.exp %81 : vector<8x128xf32>
      %cst_46 = arith.constant 1.000000e+00 : f32
      %83 = vector.broadcast %cst_46 : f32 to vector<8x128xf32>
      %84 = arith.addf %83, %82 : vector<8x128xf32>
      %85 = arith.divf %83, %84 : vector<8x128xf32>
      %86 = vector.extract_strided_slice %74 {offsets = [0, 128], sizes = [8, 128], strides = [1, 1]} : vector<8x384xf32> to vector<8x128xf32>
      %87 = vector.extract_strided_slice %77 {offsets = [0, 128], sizes = [8, 128], strides = [1, 1]} : vector<8x384xf32> to vector<8x128xf32>
      %88 = arith.addf %86, %87 : vector<8x128xf32>
      %89 = arith.negf %88 : vector<8x128xf32>
      %90 = math.exp %89 : vector<8x128xf32>
      %cst_47 = arith.constant 1.000000e+00 : f32
      %91 = vector.broadcast %cst_47 : f32 to vector<8x128xf32>
      %92 = arith.addf %91, %90 : vector<8x128xf32>
      %93 = arith.divf %91, %92 : vector<8x128xf32>
      %94 = vector.extract_strided_slice %74 {offsets = [0, 256], sizes = [8, 128], strides = [1, 1]} : vector<8x384xf32> to vector<8x128xf32>
      %95 = vector.extract_strided_slice %77 {offsets = [0, 256], sizes = [8, 128], strides = [1, 1]} : vector<8x384xf32> to vector<8x128xf32>
      %96 = arith.mulf %85, %95 : vector<8x128xf32>
      %97 = arith.addf %94, %96 : vector<8x128xf32>
      %98 = math.tanh %97 : vector<8x128xf32>
      %cst_48 = arith.constant 1.000000e+00 : f32
      %99 = vector.broadcast %cst_48 : f32 to vector<8x128xf32>
      %100 = arith.subf %99, %93 : vector<8x128xf32>
      %101 = arith.mulf %100, %98 : vector<8x128xf32>
      %102 = arith.mulf %93, %73 : vector<8x128xf32>
      %103 = arith.addf %101, %102 : vector<8x128xf32>
      %c16 = arith.constant 16 : index
      %c0_49 = arith.constant 0 : index
      %104 = vector.load %arg18[%c16, %c0_49] : memref<64x384xf32, #tpu.memory_space<vmem>>, vector<8x384xf32>
      %105 = arith.truncf %103 : vector<8x128xf32> to vector<8x128xbf16>
      %cst_50 = arith.constant dense<0.000000e+00> : vector<8x384xf32>
      %106 = tpu.matmul %105, %15, %cst_50 {dimension_numbers = #tpu.dot_dimension_numbers<[1], [0], [0], [1], [0, 0, 1, 1], [], []>} : vector<8x128xbf16>, vector<128x384xbf16>, vector<8x384xf32> -> vector<8x384xf32>
      %107 = arith.addf %106, %18 : vector<8x384xf32>
      %108 = vector.extract_strided_slice %104 {offsets = [0, 0], sizes = [8, 128], strides = [1, 1]} : vector<8x384xf32> to vector<8x128xf32>
      %109 = vector.extract_strided_slice %107 {offsets = [0, 0], sizes = [8, 128], strides = [1, 1]} : vector<8x384xf32> to vector<8x128xf32>
      %110 = arith.addf %108, %109 : vector<8x128xf32>
      %111 = arith.negf %110 : vector<8x128xf32>
      %112 = math.exp %111 : vector<8x128xf32>
      %cst_51 = arith.constant 1.000000e+00 : f32
      %113 = vector.broadcast %cst_51 : f32 to vector<8x128xf32>
      %114 = arith.addf %113, %112 : vector<8x128xf32>
      %115 = arith.divf %113, %114 : vector<8x128xf32>
      %116 = vector.extract_strided_slice %104 {offsets = [0, 128], sizes = [8, 128], strides = [1, 1]} : vector<8x384xf32> to vector<8x128xf32>
      %117 = vector.extract_strided_slice %107 {offsets = [0, 128], sizes = [8, 128], strides = [1, 1]} : vector<8x384xf32> to vector<8x128xf32>
      %118 = arith.addf %116, %117 : vector<8x128xf32>
      %119 = arith.negf %118 : vector<8x128xf32>
      %120 = math.exp %119 : vector<8x128xf32>
      %cst_52 = arith.constant 1.000000e+00 : f32
      %121 = vector.broadcast %cst_52 : f32 to vector<8x128xf32>
      %122 = arith.addf %121, %120 : vector<8x128xf32>
      %123 = arith.divf %121, %122 : vector<8x128xf32>
      %124 = vector.extract_strided_slice %104 {offsets = [0, 256], sizes = [8, 128], strides = [1, 1]} : vector<8x384xf32> to vector<8x128xf32>
      %125 = vector.extract_strided_slice %107 {offsets = [0, 256], sizes = [8, 128], strides = [1, 1]} : vector<8x384xf32> to vector<8x128xf32>
      %126 = arith.mulf %115, %125 : vector<8x128xf32>
      %127 = arith.addf %124, %126 : vector<8x128xf32>
      %128 = math.tanh %127 : vector<8x128xf32>
      %cst_53 = arith.constant 1.000000e+00 : f32
      %129 = vector.broadcast %cst_53 : f32 to vector<8x128xf32>
      %130 = arith.subf %129, %123 : vector<8x128xf32>
      %131 = arith.mulf %130, %128 : vector<8x128xf32>
      %132 = arith.mulf %123, %103 : vector<8x128xf32>
      %133 = arith.addf %131, %132 : vector<8x128xf32>
      %c24 = arith.constant 24 : index
      %c0_54 = arith.constant 0 : index
      %134 = vector.load %arg18[%c24, %c0_54] : memref<64x384xf32, #tpu.memory_space<vmem>>, vector<8x384xf32>
      %135 = arith.truncf %133 : vector<8x128xf32> to vector<8x128xbf16>
      %cst_55 = arith.constant dense<0.000000e+00> : vector<8x384xf32>
      %136 = tpu.matmul %135, %15, %cst_55 {dimension_numbers = #tpu.dot_dimension_numbers<[1], [0], [0], [1], [0, 0, 1, 1], [], []>} : vector<8x128xbf16>, vector<128x384xbf16>, vector<8x384xf32> -> vector<8x384xf32>
      %137 = arith.addf %136, %18 : vector<8x384xf32>
      %138 = vector.extract_strided_slice %134 {offsets = [0, 0], sizes = [8, 128], strides = [1, 1]} : vector<8x384xf32> to vector<8x128xf32>
      %139 = vector.extract_strided_slice %137 {offsets = [0, 0], sizes = [8, 128], strides = [1, 1]} : vector<8x384xf32> to vector<8x128xf32>
      %140 = arith.addf %138, %139 : vector<8x128xf32>
      %141 = arith.negf %140 : vector<8x128xf32>
      %142 = math.exp %141 : vector<8x128xf32>
      %cst_56 = arith.constant 1.000000e+00 : f32
      %143 = vector.broadcast %cst_56 : f32 to vector<8x128xf32>
      %144 = arith.addf %143, %142 : vector<8x128xf32>
      %145 = arith.divf %143, %144 : vector<8x128xf32>
      %146 = vector.extract_strided_slice %134 {offsets = [0, 128], sizes = [8, 128], strides = [1, 1]} : vector<8x384xf32> to vector<8x128xf32>
      %147 = vector.extract_strided_slice %137 {offsets = [0, 128], sizes = [8, 128], strides = [1, 1]} : vector<8x384xf32> to vector<8x128xf32>
      %148 = arith.addf %146, %147 : vector<8x128xf32>
      %149 = arith.negf %148 : vector<8x128xf32>
      %150 = math.exp %149 : vector<8x128xf32>
      %cst_57 = arith.constant 1.000000e+00 : f32
      %151 = vector.broadcast %cst_57 : f32 to vector<8x128xf32>
      %152 = arith.addf %151, %150 : vector<8x128xf32>
      %153 = arith.divf %151, %152 : vector<8x128xf32>
      %154 = vector.extract_strided_slice %134 {offsets = [0, 256], sizes = [8, 128], strides = [1, 1]} : vector<8x384xf32> to vector<8x128xf32>
      %155 = vector.extract_strided_slice %137 {offsets = [0, 256], sizes = [8, 128], strides = [1, 1]} : vector<8x384xf32> to vector<8x128xf32>
      %156 = arith.mulf %145, %155 : vector<8x128xf32>
      %157 = arith.addf %154, %156 : vector<8x128xf32>
      %158 = math.tanh %157 : vector<8x128xf32>
      %cst_58 = arith.constant 1.000000e+00 : f32
      %159 = vector.broadcast %cst_58 : f32 to vector<8x128xf32>
      %160 = arith.subf %159, %153 : vector<8x128xf32>
      %161 = arith.mulf %160, %158 : vector<8x128xf32>
      %162 = arith.mulf %153, %133 : vector<8x128xf32>
      %163 = arith.addf %161, %162 : vector<8x128xf32>
      %c32 = arith.constant 32 : index
      %c0_59 = arith.constant 0 : index
      %164 = vector.load %arg18[%c32, %c0_59] : memref<64x384xf32, #tpu.memory_space<vmem>>, vector<8x384xf32>
      %165 = arith.truncf %163 : vector<8x128xf32> to vector<8x128xbf16>
      %cst_60 = arith.constant dense<0.000000e+00> : vector<8x384xf32>
      %166 = tpu.matmul %165, %15, %cst_60 {dimension_numbers = #tpu.dot_dimension_numbers<[1], [0], [0], [1], [0, 0, 1, 1], [], []>} : vector<8x128xbf16>, vector<128x384xbf16>, vector<8x384xf32> -> vector<8x384xf32>
      %167 = arith.addf %166, %18 : vector<8x384xf32>
      %168 = vector.extract_strided_slice %164 {offsets = [0, 0], sizes = [8, 128], strides = [1, 1]} : vector<8x384xf32> to vector<8x128xf32>
      %169 = vector.extract_strided_slice %167 {offsets = [0, 0], sizes = [8, 128], strides = [1, 1]} : vector<8x384xf32> to vector<8x128xf32>
      %170 = arith.addf %168, %169 : vector<8x128xf32>
      %171 = arith.negf %170 : vector<8x128xf32>
      %172 = math.exp %171 : vector<8x128xf32>
      %cst_61 = arith.constant 1.000000e+00 : f32
      %173 = vector.broadcast %cst_61 : f32 to vector<8x128xf32>
      %174 = arith.addf %173, %172 : vector<8x128xf32>
      %175 = arith.divf %173, %174 : vector<8x128xf32>
      %176 = vector.extract_strided_slice %164 {offsets = [0, 128], sizes = [8, 128], strides = [1, 1]} : vector<8x384xf32> to vector<8x128xf32>
      %177 = vector.extract_strided_slice %167 {offsets = [0, 128], sizes = [8, 128], strides = [1, 1]} : vector<8x384xf32> to vector<8x128xf32>
      %178 = arith.addf %176, %177 : vector<8x128xf32>
      %179 = arith.negf %178 : vector<8x128xf32>
      %180 = math.exp %179 : vector<8x128xf32>
      %cst_62 = arith.constant 1.000000e+00 : f32
      %181 = vector.broadcast %cst_62 : f32 to vector<8x128xf32>
      %182 = arith.addf %181, %180 : vector<8x128xf32>
      %183 = arith.divf %181, %182 : vector<8x128xf32>
      %184 = vector.extract_strided_slice %164 {offsets = [0, 256], sizes = [8, 128], strides = [1, 1]} : vector<8x384xf32> to vector<8x128xf32>
      %185 = vector.extract_strided_slice %167 {offsets = [0, 256], sizes = [8, 128], strides = [1, 1]} : vector<8x384xf32> to vector<8x128xf32>
      %186 = arith.mulf %175, %185 : vector<8x128xf32>
      %187 = arith.addf %184, %186 : vector<8x128xf32>
      %188 = math.tanh %187 : vector<8x128xf32>
      %cst_63 = arith.constant 1.000000e+00 : f32
      %189 = vector.broadcast %cst_63 : f32 to vector<8x128xf32>
      %190 = arith.subf %189, %183 : vector<8x128xf32>
      %191 = arith.mulf %190, %188 : vector<8x128xf32>
      %192 = arith.mulf %183, %163 : vector<8x128xf32>
      %193 = arith.addf %191, %192 : vector<8x128xf32>
      %c40 = arith.constant 40 : index
      %c0_64 = arith.constant 0 : index
      %194 = vector.load %arg18[%c40, %c0_64] : memref<64x384xf32, #tpu.memory_space<vmem>>, vector<8x384xf32>
      %195 = arith.truncf %193 : vector<8x128xf32> to vector<8x128xbf16>
      %cst_65 = arith.constant dense<0.000000e+00> : vector<8x384xf32>
      %196 = tpu.matmul %195, %15, %cst_65 {dimension_numbers = #tpu.dot_dimension_numbers<[1], [0], [0], [1], [0, 0, 1, 1], [], []>} : vector<8x128xbf16>, vector<128x384xbf16>, vector<8x384xf32> -> vector<8x384xf32>
      %197 = arith.addf %196, %18 : vector<8x384xf32>
      %198 = vector.extract_strided_slice %194 {offsets = [0, 0], sizes = [8, 128], strides = [1, 1]} : vector<8x384xf32> to vector<8x128xf32>
      %199 = vector.extract_strided_slice %197 {offsets = [0, 0], sizes = [8, 128], strides = [1, 1]} : vector<8x384xf32> to vector<8x128xf32>
      %200 = arith.addf %198, %199 : vector<8x128xf32>
      %201 = arith.negf %200 : vector<8x128xf32>
      %202 = math.exp %201 : vector<8x128xf32>
      %cst_66 = arith.constant 1.000000e+00 : f32
      %203 = vector.broadcast %cst_66 : f32 to vector<8x128xf32>
      %204 = arith.addf %203, %202 : vector<8x128xf32>
      %205 = arith.divf %203, %204 : vector<8x128xf32>
      %206 = vector.extract_strided_slice %194 {offsets = [0, 128], sizes = [8, 128], strides = [1, 1]} : vector<8x384xf32> to vector<8x128xf32>
      %207 = vector.extract_strided_slice %197 {offsets = [0, 128], sizes = [8, 128], strides = [1, 1]} : vector<8x384xf32> to vector<8x128xf32>
      %208 = arith.addf %206, %207 : vector<8x128xf32>
      %209 = arith.negf %208 : vector<8x128xf32>
      %210 = math.exp %209 : vector<8x128xf32>
      %cst_67 = arith.constant 1.000000e+00 : f32
      %211 = vector.broadcast %cst_67 : f32 to vector<8x128xf32>
      %212 = arith.addf %211, %210 : vector<8x128xf32>
      %213 = arith.divf %211, %212 : vector<8x128xf32>
      %214 = vector.extract_strided_slice %194 {offsets = [0, 256], sizes = [8, 128], strides = [1, 1]} : vector<8x384xf32> to vector<8x128xf32>
      %215 = vector.extract_strided_slice %197 {offsets = [0, 256], sizes = [8, 128], strides = [1, 1]} : vector<8x384xf32> to vector<8x128xf32>
      %216 = arith.mulf %205, %215 : vector<8x128xf32>
      %217 = arith.addf %214, %216 : vector<8x128xf32>
      %218 = math.tanh %217 : vector<8x128xf32>
      %cst_68 = arith.constant 1.000000e+00 : f32
      %219 = vector.broadcast %cst_68 : f32 to vector<8x128xf32>
      %220 = arith.subf %219, %213 : vector<8x128xf32>
      %221 = arith.mulf %220, %218 : vector<8x128xf32>
      %222 = arith.mulf %213, %193 : vector<8x128xf32>
      %223 = arith.addf %221, %222 : vector<8x128xf32>
      %c48 = arith.constant 48 : index
      %c0_69 = arith.constant 0 : index
      %224 = vector.load %arg18[%c48, %c0_69] : memref<64x384xf32, #tpu.memory_space<vmem>>, vector<8x384xf32>
      %225 = arith.truncf %223 : vector<8x128xf32> to vector<8x128xbf16>
      %cst_70 = arith.constant dense<0.000000e+00> : vector<8x384xf32>
      %226 = tpu.matmul %225, %15, %cst_70 {dimension_numbers = #tpu.dot_dimension_numbers<[1], [0], [0], [1], [0, 0, 1, 1], [], []>} : vector<8x128xbf16>, vector<128x384xbf16>, vector<8x384xf32> -> vector<8x384xf32>
      %227 = arith.addf %226, %18 : vector<8x384xf32>
      %228 = vector.extract_strided_slice %224 {offsets = [0, 0], sizes = [8, 128], strides = [1, 1]} : vector<8x384xf32> to vector<8x128xf32>
      %229 = vector.extract_strided_slice %227 {offsets = [0, 0], sizes = [8, 128], strides = [1, 1]} : vector<8x384xf32> to vector<8x128xf32>
      %230 = arith.addf %228, %229 : vector<8x128xf32>
      %231 = arith.negf %230 : vector<8x128xf32>
      %232 = math.exp %231 : vector<8x128xf32>
      %cst_71 = arith.constant 1.000000e+00 : f32
      %233 = vector.broadcast %cst_71 : f32 to vector<8x128xf32>
      %234 = arith.addf %233, %232 : vector<8x128xf32>
      %235 = arith.divf %233, %234 : vector<8x128xf32>
      %236 = vector.extract_strided_slice %224 {offsets = [0, 128], sizes = [8, 128], strides = [1, 1]} : vector<8x384xf32> to vector<8x128xf32>
      %237 = vector.extract_strided_slice %227 {offsets = [0, 128], sizes = [8, 128], strides = [1, 1]} : vector<8x384xf32> to vector<8x128xf32>
      %238 = arith.addf %236, %237 : vector<8x128xf32>
      %239 = arith.negf %238 : vector<8x128xf32>
      %240 = math.exp %239 : vector<8x128xf32>
      %cst_72 = arith.constant 1.000000e+00 : f32
      %241 = vector.broadcast %cst_72 : f32 to vector<8x128xf32>
      %242 = arith.addf %241, %240 : vector<8x128xf32>
      %243 = arith.divf %241, %242 : vector<8x128xf32>
      %244 = vector.extract_strided_slice %224 {offsets = [0, 256], sizes = [8, 128], strides = [1, 1]} : vector<8x384xf32> to vector<8x128xf32>
      %245 = vector.extract_strided_slice %227 {offsets = [0, 256], sizes = [8, 128], strides = [1, 1]} : vector<8x384xf32> to vector<8x128xf32>
      %246 = arith.mulf %235, %245 : vector<8x128xf32>
      %247 = arith.addf %244, %246 : vector<8x128xf32>
      %248 = math.tanh %247 : vector<8x128xf32>
      %cst_73 = arith.constant 1.000000e+00 : f32
      %249 = vector.broadcast %cst_73 : f32 to vector<8x128xf32>
      %250 = arith.subf %249, %243 : vector<8x128xf32>
      %251 = arith.mulf %250, %248 : vector<8x128xf32>
      %252 = arith.mulf %243, %223 : vector<8x128xf32>
      %253 = arith.addf %251, %252 : vector<8x128xf32>
      %c56 = arith.constant 56 : index
      %c0_74 = arith.constant 0 : index
      %254 = vector.load %arg18[%c56, %c0_74] : memref<64x384xf32, #tpu.memory_space<vmem>>, vector<8x384xf32>
      %255 = arith.truncf %253 : vector<8x128xf32> to vector<8x128xbf16>
      %cst_75 = arith.constant dense<0.000000e+00> : vector<8x384xf32>
      %256 = tpu.matmul %255, %15, %cst_75 {dimension_numbers = #tpu.dot_dimension_numbers<[1], [0], [0], [1], [0, 0, 1, 1], [], []>} : vector<8x128xbf16>, vector<128x384xbf16>, vector<8x384xf32> -> vector<8x384xf32>
      %257 = arith.addf %256, %18 : vector<8x384xf32>
      %258 = vector.extract_strided_slice %254 {offsets = [0, 0], sizes = [8, 128], strides = [1, 1]} : vector<8x384xf32> to vector<8x128xf32>
      %259 = vector.extract_strided_slice %257 {offsets = [0, 0], sizes = [8, 128], strides = [1, 1]} : vector<8x384xf32> to vector<8x128xf32>
      %260 = arith.addf %258, %259 : vector<8x128xf32>
      %261 = arith.negf %260 : vector<8x128xf32>
      %262 = math.exp %261 : vector<8x128xf32>
      %cst_76 = arith.constant 1.000000e+00 : f32
      %263 = vector.broadcast %cst_76 : f32 to vector<8x128xf32>
      %264 = arith.addf %263, %262 : vector<8x128xf32>
      %265 = arith.divf %263, %264 : vector<8x128xf32>
      %266 = vector.extract_strided_slice %254 {offsets = [0, 128], sizes = [8, 128], strides = [1, 1]} : vector<8x384xf32> to vector<8x128xf32>
      %267 = vector.extract_strided_slice %257 {offsets = [0, 128], sizes = [8, 128], strides = [1, 1]} : vector<8x384xf32> to vector<8x128xf32>
      %268 = arith.addf %266, %267 : vector<8x128xf32>
      %269 = arith.negf %268 : vector<8x128xf32>
      %270 = math.exp %269 : vector<8x128xf32>
      %cst_77 = arith.constant 1.000000e+00 : f32
      %271 = vector.broadcast %cst_77 : f32 to vector<8x128xf32>
      %272 = arith.addf %271, %270 : vector<8x128xf32>
      %273 = arith.divf %271, %272 : vector<8x128xf32>
      %274 = vector.extract_strided_slice %254 {offsets = [0, 256], sizes = [8, 128], strides = [1, 1]} : vector<8x384xf32> to vector<8x128xf32>
      %275 = vector.extract_strided_slice %257 {offsets = [0, 256], sizes = [8, 128], strides = [1, 1]} : vector<8x384xf32> to vector<8x128xf32>
      %276 = arith.mulf %265, %275 : vector<8x128xf32>
      %277 = arith.addf %274, %276 : vector<8x128xf32>
      %278 = math.tanh %277 : vector<8x128xf32>
      %cst_78 = arith.constant 1.000000e+00 : f32
      %279 = vector.broadcast %cst_78 : f32 to vector<8x128xf32>
      %280 = arith.subf %279, %273 : vector<8x128xf32>
      %281 = arith.mulf %280, %278 : vector<8x128xf32>
      %282 = arith.mulf %273, %253 : vector<8x128xf32>
      %283 = arith.addf %281, %282 : vector<8x128xf32>
      %284 = arith.mulf %73, %38 : vector<8x128xf32>
      %cst_79 = arith.constant dense<0.000000e+00> : vector<8xf32>
      %285 = vector.multi_reduction <add>, %284, %cst_79 [1] : vector<8x128xf32> to vector<8xf32>
      %286 = vector.shape_cast %285 : vector<8xf32> to vector<8x1xf32>
      %287 = arith.mulf %103, %38 : vector<8x128xf32>
      %cst_80 = arith.constant dense<0.000000e+00> : vector<8xf32>
      %288 = vector.multi_reduction <add>, %287, %cst_80 [1] : vector<8x128xf32> to vector<8xf32>
      %289 = vector.shape_cast %288 : vector<8xf32> to vector<8x1xf32>
      %290 = arith.mulf %133, %38 : vector<8x128xf32>
      %cst_81 = arith.constant dense<0.000000e+00> : vector<8xf32>
      %291 = vector.multi_reduction <add>, %290, %cst_81 [1] : vector<8x128xf32> to vector<8xf32>
      %292 = vector.shape_cast %291 : vector<8xf32> to vector<8x1xf32>
      %293 = arith.mulf %163, %38 : vector<8x128xf32>
      %cst_82 = arith.constant dense<0.000000e+00> : vector<8xf32>
      %294 = vector.multi_reduction <add>, %293, %cst_82 [1] : vector<8x128xf32> to vector<8xf32>
      %295 = vector.shape_cast %294 : vector<8xf32> to vector<8x1xf32>
      %296 = arith.mulf %193, %38 : vector<8x128xf32>
      %cst_83 = arith.constant dense<0.000000e+00> : vector<8xf32>
      %297 = vector.multi_reduction <add>, %296, %cst_83 [1] : vector<8x128xf32> to vector<8xf32>
      %298 = vector.shape_cast %297 : vector<8xf32> to vector<8x1xf32>
      %299 = arith.mulf %223, %38 : vector<8x128xf32>
      %cst_84 = arith.constant dense<0.000000e+00> : vector<8xf32>
      %300 = vector.multi_reduction <add>, %299, %cst_84 [1] : vector<8x128xf32> to vector<8xf32>
      %301 = vector.shape_cast %300 : vector<8xf32> to vector<8x1xf32>
      %302 = arith.mulf %253, %38 : vector<8x128xf32>
      %cst_85 = arith.constant dense<0.000000e+00> : vector<8xf32>
      %303 = vector.multi_reduction <add>, %302, %cst_85 [1] : vector<8x128xf32> to vector<8xf32>
      %304 = vector.shape_cast %303 : vector<8xf32> to vector<8x1xf32>
      %305 = arith.mulf %283, %38 : vector<8x128xf32>
      %cst_86 = arith.constant dense<0.000000e+00> : vector<8xf32>
      %306 = vector.multi_reduction <add>, %305, %cst_86 [1] : vector<8x128xf32> to vector<8xf32>
      %307 = vector.shape_cast %306 : vector<8xf32> to vector<8x1xf32>
      %308 = arith.mulf %73, %42 : vector<8x128xf32>
      %cst_87 = arith.constant dense<0.000000e+00> : vector<8xf32>
      %309 = vector.multi_reduction <add>, %308, %cst_87 [1] : vector<8x128xf32> to vector<8xf32>
      %310 = vector.shape_cast %309 : vector<8xf32> to vector<8x1xf32>
      %311 = arith.mulf %103, %42 : vector<8x128xf32>
      %cst_88 = arith.constant dense<0.000000e+00> : vector<8xf32>
      %312 = vector.multi_reduction <add>, %311, %cst_88 [1] : vector<8x128xf32> to vector<8xf32>
      %313 = vector.shape_cast %312 : vector<8xf32> to vector<8x1xf32>
      %314 = arith.mulf %133, %42 : vector<8x128xf32>
      %cst_89 = arith.constant dense<0.000000e+00> : vector<8xf32>
      %315 = vector.multi_reduction <add>, %314, %cst_89 [1] : vector<8x128xf32> to vector<8xf32>
      %316 = vector.shape_cast %315 : vector<8xf32> to vector<8x1xf32>
      %317 = arith.mulf %163, %42 : vector<8x128xf32>
      %cst_90 = arith.constant dense<0.000000e+00> : vector<8xf32>
      %318 = vector.multi_reduction <add>, %317, %cst_90 [1] : vector<8x128xf32> to vector<8xf32>
      %319 = vector.shape_cast %318 : vector<8xf32> to vector<8x1xf32>
      %320 = arith.mulf %193, %42 : vector<8x128xf32>
      %cst_91 = arith.constant dense<0.000000e+00> : vector<8xf32>
      %321 = vector.multi_reduction <add>, %320, %cst_91 [1] : vector<8x128xf32> to vector<8xf32>
      %322 = vector.shape_cast %321 : vector<8xf32> to vector<8x1xf32>
      %323 = arith.mulf %223, %42 : vector<8x128xf32>
      %cst_92 = arith.constant dense<0.000000e+00> : vector<8xf32>
      %324 = vector.multi_reduction <add>, %323, %cst_92 [1] : vector<8x128xf32> to vector<8xf32>
      %325 = vector.shape_cast %324 : vector<8xf32> to vector<8x1xf32>
      %326 = arith.mulf %253, %42 : vector<8x128xf32>
      %cst_93 = arith.constant dense<0.000000e+00> : vector<8xf32>
      %327 = vector.multi_reduction <add>, %326, %cst_93 [1] : vector<8x128xf32> to vector<8xf32>
      %328 = vector.shape_cast %327 : vector<8xf32> to vector<8x1xf32>
      %329 = arith.mulf %283, %42 : vector<8x128xf32>
      %cst_94 = arith.constant dense<0.000000e+00> : vector<8xf32>
      %330 = vector.multi_reduction <add>, %329, %cst_94 [1] : vector<8x128xf32> to vector<8xf32>
      %331 = vector.shape_cast %330 : vector<8xf32> to vector<8x1xf32>
      %332 = arith.maximumf %286, %289 : vector<8x1xf32>
      %333 = arith.maximumf %332, %292 : vector<8x1xf32>
      %334 = arith.maximumf %333, %295 : vector<8x1xf32>
      %335 = arith.maximumf %334, %298 : vector<8x1xf32>
      %336 = arith.maximumf %335, %301 : vector<8x1xf32>
      %337 = arith.maximumf %336, %304 : vector<8x1xf32>
      %338 = arith.maximumf %337, %307 : vector<8x1xf32>
      %339 = arith.subf %286, %338 : vector<8x1xf32>
      %340 = math.exp %339 : vector<8x1xf32>
      %341 = arith.subf %289, %338 : vector<8x1xf32>
      %342 = math.exp %341 : vector<8x1xf32>
      %343 = arith.subf %292, %338 : vector<8x1xf32>
      %344 = math.exp %343 : vector<8x1xf32>
      %345 = arith.subf %295, %338 : vector<8x1xf32>
      %346 = math.exp %345 : vector<8x1xf32>
      %347 = arith.subf %298, %338 : vector<8x1xf32>
      %348 = math.exp %347 : vector<8x1xf32>
      %349 = arith.subf %301, %338 : vector<8x1xf32>
      %350 = math.exp %349 : vector<8x1xf32>
      %351 = arith.subf %304, %338 : vector<8x1xf32>
      %352 = math.exp %351 : vector<8x1xf32>
      %353 = arith.subf %307, %338 : vector<8x1xf32>
      %354 = math.exp %353 : vector<8x1xf32>
      %355 = arith.addf %340, %342 : vector<8x1xf32>
      %356 = arith.addf %355, %344 : vector<8x1xf32>
      %357 = arith.addf %356, %346 : vector<8x1xf32>
      %358 = arith.addf %357, %348 : vector<8x1xf32>
      %359 = arith.addf %358, %350 : vector<8x1xf32>
      %360 = arith.addf %359, %352 : vector<8x1xf32>
      %361 = arith.addf %360, %354 : vector<8x1xf32>
      %362 = arith.divf %340, %361 : vector<8x1xf32>
      %363 = arith.divf %342, %361 : vector<8x1xf32>
      %364 = arith.divf %344, %361 : vector<8x1xf32>
      %365 = arith.divf %346, %361 : vector<8x1xf32>
      %366 = arith.divf %348, %361 : vector<8x1xf32>
      %367 = arith.divf %350, %361 : vector<8x1xf32>
      %368 = arith.divf %352, %361 : vector<8x1xf32>
      %369 = arith.divf %354, %361 : vector<8x1xf32>
      %370 = arith.maximumf %310, %313 : vector<8x1xf32>
      %371 = arith.maximumf %370, %316 : vector<8x1xf32>
      %372 = arith.maximumf %371, %319 : vector<8x1xf32>
      %373 = arith.maximumf %372, %322 : vector<8x1xf32>
      %374 = arith.maximumf %373, %325 : vector<8x1xf32>
      %375 = arith.maximumf %374, %328 : vector<8x1xf32>
      %376 = arith.maximumf %375, %331 : vector<8x1xf32>
      %377 = arith.subf %310, %376 : vector<8x1xf32>
      %378 = math.exp %377 : vector<8x1xf32>
      %379 = arith.subf %313, %376 : vector<8x1xf32>
      %380 = math.exp %379 : vector<8x1xf32>
      %381 = arith.subf %316, %376 : vector<8x1xf32>
      %382 = math.exp %381 : vector<8x1xf32>
      %383 = arith.subf %319, %376 : vector<8x1xf32>
      %384 = math.exp %383 : vector<8x1xf32>
      %385 = arith.subf %322, %376 : vector<8x1xf32>
      %386 = math.exp %385 : vector<8x1xf32>
      %387 = arith.subf %325, %376 : vector<8x1xf32>
      %388 = math.exp %387 : vector<8x1xf32>
      %389 = arith.subf %328, %376 : vector<8x1xf32>
      %390 = math.exp %389 : vector<8x1xf32>
      %391 = arith.subf %331, %376 : vector<8x1xf32>
      %392 = math.exp %391 : vector<8x1xf32>
      %393 = arith.addf %378, %380 : vector<8x1xf32>
      %394 = arith.addf %393, %382 : vector<8x1xf32>
      %395 = arith.addf %394, %384 : vector<8x1xf32>
      %396 = arith.addf %395, %386 : vector<8x1xf32>
      %397 = arith.addf %396, %388 : vector<8x1xf32>
      %398 = arith.addf %397, %390 : vector<8x1xf32>
      %399 = arith.addf %398, %392 : vector<8x1xf32>
      %400 = arith.divf %378, %399 : vector<8x1xf32>
      %401 = arith.divf %380, %399 : vector<8x1xf32>
      %402 = arith.divf %382, %399 : vector<8x1xf32>
      %403 = arith.divf %384, %399 : vector<8x1xf32>
      %404 = arith.divf %386, %399 : vector<8x1xf32>
      %405 = arith.divf %388, %399 : vector<8x1xf32>
      %406 = arith.divf %390, %399 : vector<8x1xf32>
      %407 = arith.divf %392, %399 : vector<8x1xf32>
      %408 = vector.broadcast %362 : vector<8x1xf32> to vector<8x128xf32>
      %409 = arith.mulf %408, %73 : vector<8x128xf32>
      %410 = vector.broadcast %400 : vector<8x1xf32> to vector<8x128xf32>
      %411 = arith.mulf %410, %73 : vector<8x128xf32>
      %412 = vector.broadcast %363 : vector<8x1xf32> to vector<8x128xf32>
      %413 = arith.mulf %412, %103 : vector<8x128xf32>
      %414 = arith.addf %409, %413 : vector<8x128xf32>
      %415 = vector.broadcast %401 : vector<8x1xf32> to vector<8x128xf32>
      %416 = arith.mulf %415, %103 : vector<8x128xf32>
      %417 = arith.addf %411, %416 : vector<8x128xf32>
      %418 = arith.addf %73, %103 : vector<8x128xf32>
      %419 = vector.broadcast %364 : vector<8x1xf32> to vector<8x128xf32>
      %420 = arith.mulf %419, %133 : vector<8x128xf32>
      %421 = arith.addf %414, %420 : vector<8x128xf32>
      %422 = vector.broadcast %402 : vector<8x1xf32> to vector<8x128xf32>
      %423 = arith.mulf %422, %133 : vector<8x128xf32>
      %424 = arith.addf %417, %423 : vector<8x128xf32>
      %425 = arith.addf %418, %133 : vector<8x128xf32>
      %426 = vector.broadcast %365 : vector<8x1xf32> to vector<8x128xf32>
      %427 = arith.mulf %426, %163 : vector<8x128xf32>
      %428 = arith.addf %421, %427 : vector<8x128xf32>
      %429 = vector.broadcast %403 : vector<8x1xf32> to vector<8x128xf32>
      %430 = arith.mulf %429, %163 : vector<8x128xf32>
      %431 = arith.addf %424, %430 : vector<8x128xf32>
      %432 = arith.addf %425, %163 : vector<8x128xf32>
      %433 = vector.broadcast %366 : vector<8x1xf32> to vector<8x128xf32>
      %434 = arith.mulf %433, %193 : vector<8x128xf32>
      %435 = arith.addf %428, %434 : vector<8x128xf32>
      %436 = vector.broadcast %404 : vector<8x1xf32> to vector<8x128xf32>
      %437 = arith.mulf %436, %193 : vector<8x128xf32>
      %438 = arith.addf %431, %437 : vector<8x128xf32>
      %439 = arith.addf %432, %193 : vector<8x128xf32>
      %440 = vector.broadcast %367 : vector<8x1xf32> to vector<8x128xf32>
      %441 = arith.mulf %440, %223 : vector<8x128xf32>
      %442 = arith.addf %435, %441 : vector<8x128xf32>
      %443 = vector.broadcast %405 : vector<8x1xf32> to vector<8x128xf32>
      %444 = arith.mulf %443, %223 : vector<8x128xf32>
      %445 = arith.addf %438, %444 : vector<8x128xf32>
      %446 = arith.addf %439, %223 : vector<8x128xf32>
      %447 = vector.broadcast %368 : vector<8x1xf32> to vector<8x128xf32>
      %448 = arith.mulf %447, %253 : vector<8x128xf32>
      %449 = arith.addf %442, %448 : vector<8x128xf32>
      %450 = vector.broadcast %406 : vector<8x1xf32> to vector<8x128xf32>
      %451 = arith.mulf %450, %253 : vector<8x128xf32>
      %452 = arith.addf %445, %451 : vector<8x128xf32>
      %453 = arith.addf %446, %253 : vector<8x128xf32>
      %454 = vector.broadcast %369 : vector<8x1xf32> to vector<8x128xf32>
      %455 = arith.mulf %454, %283 : vector<8x128xf32>
      %456 = arith.addf %449, %455 : vector<8x128xf32>
      %457 = vector.broadcast %407 : vector<8x1xf32> to vector<8x128xf32>
      %458 = arith.mulf %457, %283 : vector<8x128xf32>
      %459 = arith.addf %452, %458 : vector<8x128xf32>
      %460 = arith.addf %453, %283 : vector<8x128xf32>
      %cst_95 = arith.constant 1.250000e-01 : f32
      %461 = vector.broadcast %cst_95 : f32 to vector<8x128xf32>
      %462 = arith.mulf %460, %461 : vector<8x128xf32>
      %463 = tpu.concatenate %283, %456, %459, %38, %42, %462 in 1 : vector<8x128xf32>, vector<8x128xf32>, vector<8x128xf32>, vector<8x128xf32>, vector<8x128xf32>, vector<8x128xf32> -> vector<8x768xf32>
      %464 = arith.truncf %463 : vector<8x768xf32> to vector<8x768xbf16>
      %c0_96 = arith.constant 0 : index
      %c0_97 = arith.constant 0 : index
      %465 = vector.load %arg14[%c0_96, %c0_97] : memref<768x32xbf16, #tpu.memory_space<vmem>>, vector<768x32xbf16>
      %cst_98 = arith.constant dense<0.000000e+00> : vector<8x32xf32>
      %466 = tpu.matmul %464, %465, %cst_98 {dimension_numbers = #tpu.dot_dimension_numbers<[1], [0], [0], [1], [0, 0, 1, 1], [], []>} : vector<8x768xbf16>, vector<768x32xbf16>, vector<8x32xf32> -> vector<8x32xf32>
      %c0_99 = arith.constant 0 : index
      %c0_100 = arith.constant 0 : index
      %467 = vector.load %arg15[%c0_99, %c0_100] : memref<1x32xf32, #tpu.memory_space<vmem>>, vector<1x32xf32>
      %468 = vector.broadcast %467 : vector<1x32xf32> to vector<8x32xf32>
      %469 = arith.addf %466, %468 : vector<8x32xf32>
      %470 = math.tanh %469 : vector<8x32xf32>
      %c0_101 = arith.constant 0 : index
      %c0_102 = arith.constant 0 : index
      %471 = vector.load %arg19[%c0_101, %c0_102] : memref<8x32xf32, #tpu.memory_space<vmem>>, vector<8x32xf32>
      tpu.vector_store %arg19[%c0_101, %c0_102], %470 {strides = array<i32>} : memref<8x32xf32, #tpu.memory_space<vmem>>, vector<8x32xf32>,
    } else {
    }
    %c0 = arith.constant 0 : index
    %c0_1 = arith.constant 0 : index
    %3 = vector.load %arg16[%c0, %c0_1] : memref<128x32xbf16, #tpu.memory_space<vmem>>, vector<128x32xbf16>
    %c0_2 = arith.constant 0 : index
    %c0_3 = arith.constant 0 : index
    %4 = vector.load %arg19[%c0_2, %c0_3] : memref<8x32xf32, #tpu.memory_space<vmem>>, vector<8x32xf32>
    %5 = arith.truncf %4 : vector<8x32xf32> to vector<8x32xbf16>
    %cst = arith.constant dense<0.000000e+00> : vector<8x128xf32>
    %6 = tpu.matmul %5, %3, %cst {dimension_numbers = #tpu.dot_dimension_numbers<[1], [1], [0], [0], [0, 0, 1, 0], [], []>} : vector<8x32xbf16>, vector<128x32xbf16>, vector<8x128xf32> -> vector<8x128xf32>
    %c0_4 = arith.constant 0 : index
    %c0_5 = arith.constant 0 : index
    %7 = vector.load %arg17[%c0_4, %c0_5] : memref<8x128xf32, #tpu.memory_space<vmem>>, vector<8x128xf32>
    tpu.vector_store %arg17[%c0_4, %c0_5], %6 {strides = array<i32>} : memref<8x128xf32, #tpu.memory_space<vmem>>, vector<8x128xf32>,
    return
  }
  func.func @transform_0(%arg0: i32) -> (i32, i32) {
    %c0_i32 = arith.constant 0 : i32
    %c0_i32_0 = arith.constant 0 : i32
    %c0_i32_1 = arith.constant 0 : i32
    return %c0_i32, %c0_i32_0 : i32, i32
  }
  func.func @transform_1(%arg0: i32) -> (i32, i32) {
    %c0_i32 = arith.constant 0 : i32
    %c0_i32_0 = arith.constant 0 : i32
    %c0_i32_1 = arith.constant 0 : i32
    return %c0_i32, %c0_i32_0 : i32, i32
  }
  func.func @transform_2(%arg0: i32) -> (i32, i32) {
    %c0_i32 = arith.constant 0 : i32
    %c0_i32_0 = arith.constant 0 : i32
    %c0_i32_1 = arith.constant 0 : i32
    return %c0_i32, %c0_i32_0 : i32, i32
  }
  func.func @transform_3(%arg0: i32) -> (i32, i32) {
    %c0_i32 = arith.constant 0 : i32
    %c0_i32_0 = arith.constant 0 : i32
    %c0_i32_1 = arith.constant 0 : i32
    return %c0_i32, %c0_i32_0 : i32, i32
  }
  func.func @transform_4(%arg0: i32) -> (i32, i32) {
    %c0_i32 = arith.constant 0 : i32
    %c0_i32_0 = arith.constant 0 : i32
    %c0_i32_1 = arith.constant 0 : i32
    return %c0_i32, %c0_i32_0 : i32, i32
  }
  func.func @transform_5(%arg0: i32) -> (i32, i32) {
    %c0_i32 = arith.constant 0 : i32
    %c0_i32_0 = arith.constant 0 : i32
    %c0_i32_1 = arith.constant 0 : i32
    return %c0_i32, %c0_i32_0 : i32, i32
  }
  func.func @transform_6(%arg0: i32) -> (i32, i32) {
    %c0_i32 = arith.constant 0 : i32
    %c0_i32_0 = arith.constant 0 : i32
    %c0_i32_1 = arith.constant 0 : i32
    return %c0_i32, %c0_i32_0 : i32, i32
  }
  func.func @transform_7(%arg0: i32) -> (i32, i32) {
    %c0_i32 = arith.constant 0 : i32
    %c0_i32_0 = arith.constant 0 : i32
    %c0_i32_1 = arith.constant 0 : i32
    return %c0_i32, %c0_i32_0 : i32, i32
  }
  func.func @transform_8(%arg0: i32) -> (i32, i32) {
    %c0_i32 = arith.constant 0 : i32
    %c0_i32_0 = arith.constant 0 : i32
    %c0_i32_1 = arith.constant 0 : i32
    return %c0_i32, %c0_i32_0 : i32, i32
  }
  func.func @transform_9(%arg0: i32) -> (i32, i32) {
    %c0_i32 = arith.constant 0 : i32
    %c0_i32_0 = arith.constant 0 : i32
    %c0_i32_1 = arith.constant 0 : i32
    return %c0_i32, %c0_i32_0 : i32, i32
  }
  func.func @transform_10(%arg0: i32) -> (i32, i32) {
    %c0_i32 = arith.constant 0 : i32
    %c0_i32_0 = arith.constant 0 : i32
    %c0_i32_1 = arith.constant 0 : i32
    return %c0_i32, %c0_i32_0 : i32, i32
  }
  func.func @transform_11(%arg0: i32) -> (i32, i32) {
    %c0_i32 = arith.constant 0 : i32
    %c0_i32_0 = arith.constant 0 : i32
    %c0_i32_1 = arith.constant 0 : i32
    return %c0_i32, %c0_i32_0 : i32, i32
  }
  func.func @transform_12(%arg0: i32) -> (i32, i32) {
    %c0_i32 = arith.constant 0 : i32
    %c0_i32_0 = arith.constant 0 : i32
    %c0_i32_1 = arith.constant 0 : i32
    return %c0_i32, %c0_i32_0 : i32, i32
  }
  func.func @transform_13(%arg0: i32) -> (i32, i32) {
    %c0_i32 = arith.constant 0 : i32
    %c0_i32_0 = arith.constant 0 : i32
    %c0_i32_1 = arith.constant 0 : i32
    return %c0_i32, %c0_i32_0 : i32, i32
  }
  func.func @transform_14(%arg0: i32) -> (i32, i32) {
    %c0_i32 = arith.constant 0 : i32
    %c0_i32_0 = arith.constant 0 : i32
    %c0_i32_1 = arith.constant 0 : i32
    return %c0_i32, %c0_i32_0 : i32, i32
  }
  func.func @transform_15(%arg0: i32) -> (i32, i32) {
    %c0_i32 = arith.constant 0 : i32
    %c0_i32_0 = arith.constant 0 : i32
    return %arg0, %c0_i32 : i32, i32
  }
  func.func @transform_16(%arg0: i32) -> (i32, i32) {
    %c0_i32 = arith.constant 0 : i32
    %c0_i32_0 = arith.constant 0 : i32
    return %c0_i32, %arg0 : i32, i32
  }
}

</mosaic_0001>

<bundles_post_ra>
// kernel: star_forward.1
= control target key start
LH: loop header
LB: loop body
LE: loop exit
PB: predicated region body
PF: predicated region fallthrough
CT: control target
= control target key end

     0   :  { %s3689_s21 = smov 0   ;;  %s4705_s0 = inlined_call_operand.vmem [shape: bf16[64,32], index: 0, kind: input, shape index: {}]   ;;  %s4706_s1 = inlined_call_operand.vmem [shape: bf16[8,32], index: 1, kind: input, shape index: {}]   ;;  %s4707_s2 = inlined_call_operand.vmem [shape: bf16[8,32], index: 2, kind: input, shape index: {}]   ;;  %s4708_s3 = inlined_call_operand.vmem [shape: bf16[8,32], index: 3, kind: input, shape index: {}]   ;;  %s4709_s4 = inlined_call_operand.vmem [shape: bf16[8,32], index: 4, kind: input, shape index: {}]   ;;  %s4710_s5 = inlined_call_operand.vmem [shape: bf16[8,32], index: 5, kind: input, shape index: {}]   ;;  %s4711_s6 = inlined_call_operand.vmem [shape: bf16[8,32], index: 6, kind: input, shape index: {}]   ;;  %s4712_s7 = inlined_call_operand.vmem [shape: bf16[32,384], index: 7, kind: input, shape index: {}]   ;;  %s4713_s8 = inlined_call_operand.vmem [shape: bf16[128,384], index: 8, kind: input, shape index: {}]   ;;  %s4714_s9 = inlined_call_operand.vmem [shape: f32[1,384], index: 9, kind: input, shape index: {}]   ;;  %s4715_s10 = inlined_call_operand.vmem [shape: f32[1,384], index: 10, kind: input, shape index: {}]   ;;  %s4716_s11 = inlined_call_operand.vmem [shape: bf16[32,128], index: 11, kind: input, shape index: {}]   ;;  %s4717_s12 = inlined_call_operand.vmem [shape: bf16[32,128], index: 12, kind: input, shape index: {}]   ;;  %s4718_s13 = inlined_call_operand.vmem [shape: bf16[768,32], index: 13, kind: input, shape index: {}]   ;;  %s4719_s14 = inlined_call_operand.vmem [shape: f32[1,32], index: 14, kind: input, shape index: {}]   ;;  %s4720_s15 = inlined_call_operand.vmem [shape: bf16[256,32], index: 15, kind: input, shape index: {}]   ;;  %s4721_s16 = inlined_call_operand.vmem [shape: f32[8,256], index: 16, kind: output, shape index: {}]  }
   0x1   :  { %4729 = sst [smem:[#allocation13_spill]] %s4705_s0 }
   0x2 LB: > { %4730 = sst [smem:[#allocation4_spill]] %s3597_s21  ;;  %s2828_s22 = sadd.s32 4294967295, %s3597_s21   ;;  %s3597_s21 = sphi %s3689_s21, %s26_s21  }
   0x3   : > { %p2832_p0 = scmp.ge.s32.totalorder %s3597_s21, 1  ;;  %p463_p1 = scmp.lt.s32.totalorder %s3597_s21, 3 }
   0x5   : > { %p464_p2 = pnand %p2832_p0, %p463_p1 }
   0x6   : > { %s2833_s23 = sshll.u32 (!%p464_p2), %s2828_s22, 4  ;;  %p518_p3 = scmp.lt.s32.totalorder (!%p464_p2), %s2828_s22, 1 }
   0x7   : > { %467 = sbr.rel (%p464_p2) target bundleno = 2801 (0xaf1), region = 84  ;;  %p513_p4 = scmp.lt.s32.totalorder (!%p464_p2), %s2833_s23, 31 }
   0x8   : > { %p2836_p5 = scmp.ne.s32.totalorder (!%p464_p2), %s2828_s22, 0 }
   0xc   : > { %s519_s24 = scalar_select %p518_p3, %s2828_s22, 1 }
   0xd   : > { %s4753_s23 = smov (!%p513_p4, %s2833_s23), 31  ;;  %526 = sbr.rel (%p2836_p5) target bundleno = 2537 (0x9e9), region = 88 }
   0xe   : > { %s2835_s25 = sshll.u32 %s519_s24, 3  ;;  %s2834_s26 = sshll.u32 %s4753_s23, 2 }
   0xf   : > { %s3700_s29 = scalar_lea.vmem %s4721_s16, %s2835_s25  ;;  %s3705_s17 = scalar_lea.vmem %s4720_s15, %s2834_s26 }
  0x12   : > { %v3341_v0 = vld [vmem:[%s4712_s7 + $0x1c] ss:$12 sps:$4 sm:$0xff]   ;;  %v3343_v1 = vld [vmem:[%s4712_s7 + $0x18] ss:$12 sps:$4 sm:$0xff]   ;;  %v4724_v2 = vmov 0   ;;  %s4731_s30 = sld [smem:[#allocation13_spill]]  ;;  %v545_v58 = vlaneseq }
  0x13   : > { %657 = vmatprep.mubr.bf16.mxu0 %v4724_v2  ;;  %637 = vmatprep.subr.bf16.mxu0 %v3341_v0  ;;  %v3344_v3 = vld [vmem:[%s4712_s7 + $0x4] ss:$12 sps:$4 sm:$0xff]   ;;  %v3346_v4 = vld [vmem:[%s4712_s7] ss:$12 sps:$4 sm:$0xff]   ;;  %vm612_vm0 = vcmask 261120   ;;  %v4726_v15 = vmov 0.0  }
  0x14   : > { %638 = vmatpush1.bf16.msra.mxu0 %v3343_v1  ;;  %v3347_v5 = vld [vmem:[%s4712_s7 + $0x20] ss:$12 sps:$4 sm:$0xff]   ;;  %v3352_v8 = vld [vmem:[%s4712_s7 + $0x8] ss:$12 sps:$4 sm:$0xff]   ;;  %v3753_v12 = vld [vmem:[%s4713_s8 + $0x90] ss:$12 sps:$4 sm:$0xff]  }
  0x15   : > { %639 = vmatprep.subr.bf16.mxu0 %v3344_v3  ;;  %3120 = vmatprep.subr.bf16.mxu1 %v3347_v5  ;;  %v3729_v7 = vld [vmem:[%s4713_s8 + $0xac] ss:$12 sps:$4 sm:$0xff]   ;;  %v3738_v9 = vld [vmem:[%s4713_s8 + $0xa8] ss:$12 sps:$4 sm:$0xff]   ;;  %v3780_v18 = vld [vmem:[%s4713_s8 + $0x64] ss:$12 sps:$4 sm:$0xff]  }
  0x16   : > { %3121 = vmatpush3.bf16.msra.mxu1 %v3347_v5  ;;  %v3744_v10 = vld [vmem:[%s4713_s8 + $0x94] ss:$12 sps:$4 sm:$0xff]   ;;  %v3360_v13 = vld [vmem:[%s4716_s11 + $0x8] sm:$0xff]   ;;  %v3774_v17 = vld [vmem:[%s4713_s8 + $0x78] ss:$12 sps:$4 sm:$0xff]   ;;  %vm3601_vm1 = vmmov 0  }
  0x17   : > { %3122 = vmatprep.subr.bf16.mxu1 %v3352_v8  ;;  %v3764_v14 = vld [vmem:[%s4713_s8 + $0x7c] ss:$12 sps:$4 sm:$0xff]   ;;  %v3369_v20 = vld [vmem:[%s4716_s11] sm:$0xff]   ;;  %v3812_v26 = vld [vmem:[%s4713_s8 + $0x4c] ss:$12 sps:$4 sm:$0xff]   ;;  %v3983_v59 = vshrl.u32 %v545_v58, 7 }
  0x18   : > { %v3348_v6 = vld [vmem:[%s4731_s30] sm:$0xff]   ;;  %640 = vmatpush1.bf16.msra.mxu0 %v3346_v4  ;;  %v3356_v11 = vld [vmem:[%s4731_s30 + $0x8] sm:$0xff]   ;;  %v3363_v16 = vld [vmem:[%s4731_s30 + $0x10] sm:$0xff]  }
  0x19   : > { %3124 = vmatprep.mubr.msk.bf16.mxu1 %vm612_vm0, %v3348_v6  ;;  %1105 = vmatprep.subr.bf16.mxu0 %v3729_v7  ;;  %v3365_v19 = vld [vmem:[%s4731_s30 + $0x18] sm:$0xff]   ;;  %v3795_v21 = vld [vmem:[%s4713_s8 + $0x60] ss:$12 sps:$4 sm:$0xff]   ;;  %v3822_v30 = vld [vmem:[%s4713_s8 + $0x48] ss:$12 sps:$4 sm:$0xff]   ;;  %v4728_v60 = vsub.s32 2, %v3983_v59 }
  0x1a   : > { %3123 = vmatpush3.bf16.msra.mxu1 %v3352_v8  ;;  %v836_v22 = vld [vmem:[%s4706_s1] sm:$0xf]  ;;  %v3373_v39 = vld [vmem:[%s4717_s12 + $0x8] sm:$0xff]   ;;  %v3847_v41 = vld [vmem:[%s4713_s8 + $0x30] ss:$12 sps:$4 sm:$0xff]   ;;  %v547_v62 = vsub.s32 0, %v3983_v59 }
  0x1b   : > { %2847 = vmatmul.mubr.msk.bf16.vlgmr.msra.gmra.mxu0 %vm612_vm0, %v3348_v6  ;;  %3132 = vmatprep.subr.bf16.mxu1 %v4726_v15  ;;  %v837_v23 = vunpack.c.l.bf16 %v836_v22  ;;  %v838_v24 = vld [vmem:[%s4707_s2] sm:$0xf]  ;;  %v3854_v43 = vld [vmem:[%s4713_s8 + $0x1c] ss:$12 sps:$4 sm:$0xff]   ;;  %v3867_v46 = vld [vmem:[%s4713_s8 + $0x18] ss:$12 sps:$4 sm:$0xff]  }
  0x1c   : > { %1106 = vmatpush1.bf16.msra.mxu0 %v3738_v9  ;;  %667 = vmatprep.mubr.bf16.mxu0 %v4724_v2  ;;  %v841_v25 = vld [vmem:[%s4708_s3] sm:$0xf]  ;;  %v839_v27 = vunpack.c.l.bf16 %v838_v24  ;;  %v3873_v47 = vld [vmem:[%s4713_s8 + $0x4] ss:$12 sps:$4 sm:$0xff]   ;;  %v3914_v53 = vld [vmem:[%s4713_s8 + $0x68] ss:$12 sps:$4 sm:$0xff]  }
  0x1d   : > { %1107 = vmatprep.subr.bf16.mxu0 %v3744_v10  ;;  %3125 = vmatmul.mubr.msk.bf16.vlgmr.msra.gmra.mxu1 %vm612_vm0, %v3356_v11  ;;  %v842_v28 = vunpack.c.l.bf16 %v841_v25  ;;  %v3828_v31 = vld [vmem:[%s4713_s8 + $0x34] ss:$12 sps:$4 sm:$0xff]   ;;  %v3883_v50 = vld [vmem:[%s4713_s8 + $0xb0] ss:$12 sps:$4 sm:$0xff]   ;;  %v3893_v51 = vld [vmem:[%s4713_s8 + $0x98] ss:$12 sps:$4 sm:$0xff]  }
  0x1e   : > { %3133 = vmatpush3.bf16.msra.mxu1 %v3360_v13  ;;  %3128 = vmatprep.mubr.msk.bf16.mxu1 %vm612_vm0, %v3363_v16  ;;  %v840_v29 = vadd.f32 %v839_v27, %v837_v23  ;;  %v844_v33 = vld [vmem:[%s4709_s4] sm:$0xf]  ;;  %v3924_v54 = vld [vmem:[%s4713_s8 + $0x50] ss:$12 sps:$4 sm:$0xff]   ;;  %v3933_v55 = vld [vmem:[%s4713_s8 + $0x38] ss:$12 sps:$4 sm:$0xff]  }
  0x1f   : > { %3134 = vmatprep.subr.bf16.mxu1 %v4726_v15  ;;  %v846_v34 = vld [vmem:[%s4710_s5] sm:$0xf]  ;;  %v845_v35 = vunpack.c.l.bf16 %v844_v33  ;;  %v3951_v57 = vld [vmem:[%s4713_s8 + $0x8] ss:$12 sps:$4 sm:$0xff]   ;;  %v551_v1 = vsub.s32 1, %v3983_v59 }
  0x20   : > { %1108 = vmatpush1.bf16.msra.mxu0 %v3753_v12  ;;  %v843_v32 = vadd.f32 %v842_v28, %v840_v29  ;;  %v847_v36 = vunpack.c.l.bf16 %v846_v34  ;;  %v849_v37 = vld [vmem:[%s4711_s6] sm:$0xf] }
  0x21   : > { %1109 = vmatprep.subr.bf16.mxu0 %v3764_v14  ;;  %v850_v40 = vunpack.c.l.bf16 %v849_v37  ;;  %v3377_v45 = vld [vmem:[%s4717_s12] sm:$0xff]  }
  0x22   : > { %3135 = vmatpush3.bf16.msra.mxu1 %v3369_v20  ;;  %v852_v38 = vpack.c.bf16 %v843_v32, %v843_v32  ;;  %v848_v42 = vadd.f32 %v847_v36, %v845_v35  ;;  %v3878_v48 = vld [vmem:[%s4713_s8] ss:$12 sps:$4 sm:$0xff]  }
  0x23   : > { %2848 = vmatmul.mubr.msk.bf16.gmra.mxu0 %vm612_vm0, %v3356_v11  ;;  %3140 = vmatprep.subr.bf16.mxu1 %v4726_v15  ;;  %v3904_v52 = vld [vmem:[%s4713_s8 + $0x80] ss:$12 sps:$4 sm:$0xff]  }
  0x24   : > { %1110 = vmatpush1.bf16.msra.mxu0 %v3774_v17  ;;  %677 = vmatprep.mubr.bf16.mxu0 %v4724_v2  ;;  %v851_v44 = vadd.f32 %v850_v40, %v848_v42  ;;  %v3942_v56 = vld [vmem:[%s4713_s8 + $0x20] ss:$12 sps:$4 sm:$0xff]  }
  0x25   : > { %1111 = vmatprep.subr.bf16.mxu0 %v3780_v18  ;;  %3129 = vmatmul.mubr.msk.bf16.gmra.mxu1 %vm612_vm0, %v3365_v19  ;;  %v543_v61 = vld [vmem:[%s4714_s9] sm:$0x7] }
  0x26   : > { %3136 = vmatprep.mubr.msk.bf16.mxu1 %vm3601_vm1, %v4726_v15  ;;  %v913_v49 = vpack.c.bf16 %v851_v44, %v851_v44  ;;  %v3992_v0 = vrot.slane %v543_v61, %v4728_v60  ;;  %v548_v4 = vrot.slane %v543_v61, %v547_v62  ;;  %v552_v11 = vrot.slane %v543_v61, %v551_v1 }
  0x28   : > { %1112 = vmatpush1.bf16.msra.mxu0 %v3795_v21 }
  0x29   : > { %1113 = vmatprep.subr.bf16.mxu0 %v3812_v26 }
  0x2b   : > { %2849 = vmatmul.mubr.msk.bf16.gmra.mxu0 %vm612_vm0, %v3363_v16 }
  0x2c   : > { %1114 = vmatpush1.bf16.msra.mxu0 %v3822_v30  ;;  %687 = vmatprep.mubr.bf16.mxu0 %v4724_v2 }
  0x2d   : > { %1115 = vmatprep.subr.bf16.mxu0 %v3828_v31  ;;  %3137 = vmatmul.mubr.msk.bf16.vlgmr.msra.gmra.mxu1 %vm612_vm0, %v852_v38 }
  0x2e   : > { %3141 = vmatpush3.bf16.msra.mxu1 %v3373_v39  ;;  %3144 = vmatprep.mubr.msk.bf16.mxu1 %vm3601_vm1, %v4726_v15 }
  0x2f   : > { %3142 = vmatprep.subr.bf16.mxu1 %v4726_v15 }
  0x30   : > { %1116 = vmatpush1.bf16.msra.mxu0 %v3847_v41 }
  0x31   : > { %1117 = vmatprep.subr.bf16.mxu0 %v3854_v43 }
  0x32   : > { %3143 = vmatpush3.bf16.msra.mxu1 %v3377_v45 }
  0x33   : > { %2850 = vmatmul.mubr.msk.bf16.gmra.mxu0 %vm612_vm0, %v3365_v19  ;;  %3148 = vmatprep.subr.bf16.mxu1 %v4726_v15 }
  0x34   : > { %1118 = vmatpush1.bf16.msra.mxu0 %v3867_v46  ;;  %1137 = vmatprep.mubr.bf16.mxu0 %v4724_v2 }
  0x35   : > { %1119 = vmatprep.subr.bf16.mxu0 %v3873_v47  ;;  %3145 = vmatmul.mubr.msk.bf16.vlgmr.msra.gmra.mxu1 %vm612_vm0, %v913_v49 }
  0x36   : > { %3149 = vmatpush3.bf16.msra.mxu1 %v3883_v50  ;;  %3164 = vmatprep.mubr.msk.bf16.mxu1 %vm3601_vm1, %v4726_v15 }
  0x37   : > { %3150 = vmatprep.subr.bf16.mxu1 %v4726_v15 }
  0x38   : > { %1120 = vmatpush1.bf16.msra.mxu0 %v3878_v48 }
  0x39   : > { %1211 = vmatprep.subr.bf16.mxu0 %v3729_v7 }
  0x3a   : > { %3151 = vmatpush3.bf16.msra.mxu1 %v3893_v51 }
  0x3b   : > { %1138 = vmatmul.mubr.bf16.vlgmr.msra.gmra.mxu0 %v4724_v2  ;;  %3152 = vmatprep.subr.bf16.mxu1 %v4726_v15 }
  0x3c   : > { %1212 = vmatpush1.bf16.msra.mxu0 %v3738_v9  ;;  %1243 = vmatprep.mubr.bf16.mxu0 %v4724_v2 }
  0x3d   : > { %1213 = vmatprep.subr.bf16.mxu0 %v3744_v10 }
  0x3e   : > { %3153 = vmatpush3.bf16.msra.mxu1 %v3904_v52 }
  0x3f   : > { %3154 = vmatprep.subr.bf16.mxu1 %v4726_v15 }
  0x40   : > { %1214 = vmatpush1.bf16.msra.mxu0 %v3753_v12 }
  0x41   : > { %1215 = vmatprep.subr.bf16.mxu0 %v3764_v14 }
  0x42   : > { %3155 = vmatpush3.bf16.msra.mxu1 %v3914_v53 }
  0x43   : > { %3156 = vmatprep.subr.bf16.mxu1 %v4726_v15 }
  0x44   : > { %1216 = vmatpush1.bf16.msra.mxu0 %v3774_v17 }
  0x45   : > { %1217 = vmatprep.subr.bf16.mxu0 %v3780_v18 }
  0x46   : > { %3157 = vmatpush3.bf16.msra.mxu1 %v3924_v54 }
  0x47   : > { %3158 = vmatprep.subr.bf16.mxu1 %v4726_v15 }
  0x48   : > { %1218 = vmatpush1.bf16.msra.mxu0 %v3795_v21 }
  0x49   : > { %1219 = vmatprep.subr.bf16.mxu0 %v3812_v26 }
  0x4a   : > { %3159 = vmatpush3.bf16.msra.mxu1 %v3933_v55 }
  0x4b   : > { %3160 = vmatprep.subr.bf16.mxu1 %v4726_v15 }
  0x4c   : > { %1220 = vmatpush1.bf16.msra.mxu0 %v3822_v30 }
  0x4d   : > { %1221 = vmatprep.subr.bf16.mxu0 %v3828_v31 }
  0x4e   : > { %3161 = vmatpush3.bf16.msra.mxu1 %v3942_v56 }
  0x4f   : > { %3162 = vmatprep.subr.bf16.mxu1 %v4726_v15 }
  0x50   : > { %1222 = vmatpush1.bf16.msra.mxu0 %v3847_v41 }
  0x51   : > { %1223 = vmatprep.subr.bf16.mxu0 %v3854_v43 }
  0x52   : > { %3163 = vmatpush3.bf16.msra.mxu1 %v3951_v57 }
  0x53   : > { %3168 = vmatprep.subr.bf16.mxu1 %v4726_v15 }
  0x54   : > { %1224 = vmatpush1.bf16.msra.mxu0 %v3867_v46 }
  0x55   : > { %1225 = vmatprep.subr.bf16.mxu0 %v3873_v47  ;;  %3165 = vmatmul.mubr.bf16.vlgmr.msra.gmra.mxu1 %v4724_v2 }
  0x56   : > { %3169 = vmatpush3.bf16.msra.mxu1 %v3883_v50  ;;  %3184 = vmatprep.mubr.msk.bf16.mxu1 %vm3601_vm1, %v4726_v15 }
  0x57   : > { %3170 = vmatprep.subr.bf16.mxu1 %v4726_v15 }
  0x58   : > { %1226 = vmatpush1.bf16.msra.mxu0 %v3878_v48 }
  0x59   : > { %1317 = vmatprep.subr.bf16.mxu0 %v3729_v7 }
  0x5a   : > { %3171 = vmatpush3.bf16.msra.mxu1 %v3893_v51 }
  0x5b   : > { %3172 = vmatprep.subr.bf16.mxu1 %v4726_v15 }
  0x5e   : > { %3173 = vmatpush3.bf16.msra.mxu1 %v3904_v52 }
  0x5f   : > { %3174 = vmatprep.subr.bf16.mxu1 %v4726_v15 }
  0x62   : > { %3175 = vmatpush3.bf16.msra.mxu1 %v3914_v53 }
  0x63   : > { %3176 = vmatprep.subr.bf16.mxu1 %v4726_v15 }
  0x66   : > { %3177 = vmatpush3.bf16.msra.mxu1 %v3924_v54 }
  0x67   : > { %3178 = vmatprep.subr.bf16.mxu1 %v4726_v15 }
  0x6a   : > { %3179 = vmatpush3.bf16.msra.mxu1 %v3933_v55 }
  0x6b   : > { %3180 = vmatprep.subr.bf16.mxu1 %v4726_v15 }
  0x6e   : > { %3181 = vmatpush3.bf16.msra.mxu1 %v3942_v56 }
  0x6f   : > { %3182 = vmatprep.subr.bf16.mxu1 %v4726_v15 }
  0x72   : > { %3183 = vmatpush3.bf16.msra.mxu1 %v3951_v57 }
  0x73   : > { %3188 = vmatprep.subr.bf16.mxu1 %v4726_v15 }
  0xdb   : > { %v659_v63 = vpop.f32.mrf.mxu0 }
  0xdd   : > { %v3995_v3 = vpop.f32.mrf.mxu0  ;;  %v3126_v5 = vpop.f32.mrf.mxu1 }
  0xde   : > { %v3998_v8 = vadd.f32 %v3126_v5, %v3992_v0 }
  0xdf   : > { %v663_v6 = vpop.f32.mrf.mxu0  ;;  %v4002_v16 = vpop.f32.mrf.mxu1 }
  0xe0   : > { %v4000_v13 = vadd.f32 %v663_v6, %v548_v4 }
  0xe1   : > { %v665_v19 = vpop.f32.mrf.mxu0  ;;  %v3127_v22 = vpop.f32.mrf.mxu1 }
  0xe2   : > { %v4004_v20 = vadd.f32 %v665_v19, %v552_v11  ;;  %v4007_v24 = vadd.f32 %v3127_v22, %v3992_v0 }
  0xe3   : > { %v669_v23 = vpop.f32.mrf.mxu0  ;;  %v735_v27 = vpop.f32.mrf.mxu1 }
  0xe4   : > { %v4009_v25 = vadd.f32 %v669_v23, %v548_v4  ;;  %v4012_v29 = vadd.f32 %v735_v27, %v3992_v0 }
  0xe5   : > { %v671_v28 = vpop.f32.mrf.mxu0  ;;  %v3130_v33 = vpop.f32.mrf.mxu1 }
  0xe6   : > { %v4014_v32 = vadd.f32 %v671_v28, %v552_v11  ;;  %v4017_v35 = vadd.f32 %v3130_v33, %v3992_v0 }
  0xe7   : > { %v673_v34 = vpop.f32.mrf.mxu0  ;;  %v748_v37 = vpop.f32.mrf.mxu1 }
  0xe8   : > { %4732 = vst [vmem:[#allocation5_spill] sm:$0xff] %v4017_v35  ;;  %v4019_v36 = vadd.f32 %v673_v34, %v548_v4  ;;  %v4022_v39 = vadd.f32 %v748_v37, %v3992_v0 }
  0xe9   : > { %v675_v38 = vpop.f32.mrf.mxu0  ;;  %v3131_v42 = vpop.f32.mrf.mxu1 }
  0xea   : > { %v4024_v40 = vadd.f32 %v675_v38, %v552_v11  ;;  %v4027_v45 = vadd.f32 %v3131_v42, %v3992_v0 }
  0xeb   : > { %v679_v44 = vpop.f32.mrf.mxu0  ;;  %v751_v58 = vpop.f32.mrf.mxu1 }
  0xec   : > { %4733 = vst [vmem:[#allocation6_spill] sm:$0xff] %v4027_v45  ;;  %v4029_v49 = vadd.f32 %v679_v44, %v548_v4  ;;  %v4032_v5 = vadd.f32 %v751_v58, %v3992_v0  ;;  %v819_v58 = vld [vmem:[%s4715_s10] sm:$0x7]  ;;  %v660_v45 = vadd.f32 %v659_v63, %v548_v4 }
  0xed   : > { %v681_v61 = vpop.f32.mrf.mxu0  ;;  %v906_v19 = vpop.f32.mrf.mxu1 }
  0xee   : > { %4734 = vst [vmem:[#allocation7_spill] sm:$0xff] %v4032_v5  ;;  %v4034_v6 = vadd.f32 %v681_v61, %v552_v11 }
  0xef   : > { %v683_v22 = vpop.f32.mrf.mxu0  ;;  %v3138_v27 = vpop.f32.mrf.mxu1 }
  0xf0   : > { %v4036_v23 = vadd.f32 %v683_v22, %v548_v4 }
  0xf1   : > { %v685_v28 = vpop.f32.mrf.mxu0  ;;  %v909_v34 = vpop.f32.mrf.mxu1 }
  0xf2   : > { %v4038_v33 = vadd.f32 %v685_v28, %v552_v11  ;;  %v4051_v28 = vrot.slane %v819_v58, %v547_v62  ;;  %v662_v62 = vadd.f32 %v3995_v3, %v552_v11 }
  0xf3   : > { %v689_v37 = vpop.f32.mrf.mxu0  ;;  %v3139_v42 = vpop.f32.mrf.mxu1 }
  0xf4   : > { %4735 = vst [vmem:[#allocation8_spill] sm:$0xff] %v4038_v33  ;;  %v4040_v38 = vadd.f32 %v689_v37, %v548_v4 }
  0xf5   : > { %v691_v44 = vpop.f32.mrf.mxu0  ;;  %v4047_v2 = vpop.f32.mrf.mxu1 }
  0xf6   : > { %4736 = vst [vmem:[#allocation9_spill] sm:$0xff] %v4040_v38  ;;  %v4045_v61 = vadd.f32 %v691_v44, %v552_v11  ;;  %4738 = vst [vmem:[#allocation11_spill] sm:$0xff] %v4047_v2  ;;  %v4056_v38 = vrot.slane %v819_v58, %v551_v1  ;;  %v4740_v1 = vsub.s32 2, %v3983_v59 }
  0xf7   : > { %v693_v22 = vpop.f32.mrf.mxu0  ;;  %v3146_v27 = vpop.f32.mrf.mxu1 }
  0xf8   : > { %4737 = vst [vmem:[#allocation10_spill] sm:$0xff] %v4045_v61  ;;  %v4049_v15 = vadd.f32 %v693_v22, %v548_v4 }
  0xf9   : > { %v695_v34 = vpop.f32.mrf.mxu0  ;;  %v970_v37 = vpop.f32.mrf.mxu1 }
  0xfa   : > { %v4053_v60 = vadd.f32 %v695_v34, %v552_v11  ;;  %v733_v11 = vadd.f32 %v4002_v16, %v3992_v0  ;;  %v4741_v16 = vmov 0.0  }
  0xfb   : > { %v1139_v42 = vpop.f32.mrf.mxu0  ;;  %v3147_v44 = vpop.f32.mrf.mxu1 }
  0xfc   : > { %4739 = vst [vmem:[#allocation12_spill] sm:$0xff] %v4053_v60  ;;  %v1140_v35 = vadd.f32 %v1139_v42, %v4051_v28  ;;  %v4062_v42 = vrot.slane %v819_v58, %v4740_v1 }
  0xfd   : > { %v1141_v61 = vpop.f32.mrf.mxu0 }
  0xfe   : > { %v1186_v5 = vadd.f32 %v1140_v35, %v660_v45  ;;  %v1142_v22 = vadd.f32 %v1141_v61, %v4056_v38 }
  0xff   : > { %v1143_v2 = vpop.f32.mrf.mxu0 }
 0x100   : > { %v2885_v33 = vmul.f32 -1.442695, %v1186_v5  ;;  %v1193_v34 = vadd.f32 %v1142_v22, %v662_v62 }
 0x101   : > { %v1144_v27 = vpop.f32.mrf.mxu0 }
 0x102   : > { %3437 = vpow2.f32 %v2885_v33  ;;  %v2886_v60 = vmul.f32 -1.442695, %v1193_v34 }
 0x104   : > { %3439 = vpow2.f32 %v2886_v60 }
 0x10f   : > { %v3438_v37 = vpop.eup %3437 }
 0x110   : > { %v1190_v63 = vadd.f32 1.0, %v3438_v37 }
 0x111   : > { %v3440_v2 = vpop.eup %3439 }
 0x112   : > { %3441 = vrcp.f32 %v1190_v63  ;;  %v1197_v5 = vadd.f32 1.0, %v3440_v2 }
 0x114   : > { %3443 = vrcp.f32 %v1197_v5 }
 0x115   : > { %v1180_v4 = vpop.f32.mrf.mxu1 }
 0x116   : > { %v1181_v61 = vadd.f32 %v1180_v4, %v4062_v42 }
 0x117   : > { %v3166_v35 = vpop.f32.mrf.mxu1 }
 0x119   : > { %v1183_v45 = vpop.f32.mrf.mxu1 }
 0x11b   : > { %v3167_v44 = vpop.f32.mrf.mxu1 }
 0x11f   : > { %v3442_v3 = vpop.eup %3441 }
 0x120   : > { %v1200_v60 = vmul.f32 %v3442_v3, %v1181_v61 }
 0x121   : > { %v3444_v22 = vpop.eup %3443 }
 0x122   : > { %v1201_v33 = vadd.f32 %v1200_v60, %v733_v11  ;;  %v1203_v59 = vsub.f32 1.0, %v3444_v22  ;;  %v1205_v27 = vmul.f32 0.0, %v3444_v22 }
 0x124   : > { %3445 = vtanh.f32 %v1201_v33 }
 0x125   : > { %3447 = vtanh.f32 %v906_v19  ;;  %v4742_v19 = vmov 0  }
 0x131   : > { %v3446_v58 = vpop.eup %3445 }
 0x132   : > { %v1204_v62 = vmul.f32 %v3446_v58, %v1203_v59  ;;  %v4069_v37 = vpop.eup %3447 }
 0x134   : > { %v4067_v34 = vadd.f32 %v1205_v27, %v1204_v62 }
 0x136   : > { %v1949_v63 = vmul.f32 %v4069_v37, %v4067_v34  ;;  %v1210_v0 = vpack.c.bf16 %v4067_v34, %v4067_v34 }
 0x138   : > { %1950 = vadd.xlane.f32.xlu0 %v1949_v63  ;;  %1244 = vmatmul.mubr.bf16.vlgmr.msra.gmra.mxu0 %v1210_v0 }
 0x139   : > { %3185 = vmatmul.mubr.bf16.vlgmr.msra.gmra.mxu1 %v1210_v0  ;;  %1318 = vmatpush1.bf16.msra.mxu0 %v3738_v9 }
 0x13a   : > { %3189 = vmatpush3.bf16.msra.mxu1 %v3883_v50  ;;  %1319 = vmatprep.subr.bf16.mxu0 %v3744_v10 }
 0x13b   : > { %3190 = vmatprep.subr.bf16.mxu1 %v4741_v16  ;;  %1349 = vmatprep.mubr.bf16.mxu0 %v4742_v19 }
 0x13c   : > { %3204 = vmatprep.mubr.msk.bf16.mxu1 %vm3601_vm1, %v4741_v16 }
 0x13d   : > { %1320 = vmatpush1.bf16.msra.mxu0 %v3753_v12 }
 0x13e   : > { %3191 = vmatpush3.bf16.msra.mxu1 %v3893_v51  ;;  %1321 = vmatprep.subr.bf16.mxu0 %v3764_v14 }
 0x13f   : > { %3192 = vmatprep.subr.bf16.mxu1 %v4741_v16 }
 0x141   : > { %1322 = vmatpush1.bf16.msra.mxu0 %v3774_v17 }
 0x142   : > { %3193 = vmatpush3.bf16.msra.mxu1 %v3904_v52  ;;  %1323 = vmatprep.subr.bf16.mxu0 %v3780_v18 }
 0x143   : > { %3194 = vmatprep.subr.bf16.mxu1 %v4741_v16 }
 0x145   : > { %1324 = vmatpush1.bf16.msra.mxu0 %v3795_v21 }
 0x146   : > { %3195 = vmatpush3.bf16.msra.mxu1 %v3914_v53  ;;  %1325 = vmatprep.subr.bf16.mxu0 %v3812_v26 }
 0x147   : > { %3196 = vmatprep.subr.bf16.mxu1 %v4741_v16 }
 0x149   : > { %1326 = vmatpush1.bf16.msra.mxu0 %v3822_v30 }
 0x14a   : > { %3197 = vmatpush3.bf16.msra.mxu1 %v3924_v54  ;;  %1327 = vmatprep.subr.bf16.mxu0 %v3828_v31 }
 0x14b   : > { %3198 = vmatprep.subr.bf16.mxu1 %v4741_v16 }
 0x14d   : > { %1328 = vmatpush1.bf16.msra.mxu0 %v3847_v41 }
 0x14e   : > { %3199 = vmatpush3.bf16.msra.mxu1 %v3933_v55  ;;  %1329 = vmatprep.subr.bf16.mxu0 %v3854_v43 }
 0x14f   : > { %3200 = vmatprep.subr.bf16.mxu1 %v4741_v16 }
 0x151   : > { %1330 = vmatpush1.bf16.msra.mxu0 %v3867_v46 }
 0x152   : > { %3201 = vmatpush3.bf16.msra.mxu1 %v3942_v56  ;;  %1331 = vmatprep.subr.bf16.mxu0 %v3873_v47 }
 0x153   : > { %3202 = vmatprep.subr.bf16.mxu1 %v4741_v16 }
 0x155   : > { %1332 = vmatpush1.bf16.msra.mxu0 %v3878_v48 }
 0x156   : > { %3203 = vmatpush3.bf16.msra.mxu1 %v3951_v57  ;;  %1423 = vmatprep.subr.bf16.mxu0 %v3729_v7 }
 0x157   : > { %3208 = vmatprep.subr.bf16.mxu1 %v4741_v16 }
 0x1f8   : > { %v1245_v4 = vpop.f32.mrf.mxu0 }
 0x1f9   : > { %v1246_v1 = vadd.f32 %v1245_v4, %v4051_v28  ;;  %v1286_v35 = vpop.f32.mrf.mxu1 }
 0x1fa   : > { %v1247_v2 = vpop.f32.mrf.mxu0 }
 0x1fb   : > { %v1292_v45 = vadd.f32 %v1246_v1, %v4000_v13  ;;  %v3186_v5 = vpop.f32.mrf.mxu1  ;;  %v1248_v3 = vadd.f32 %v1247_v2, %v4056_v38  ;;  %v1287_v13 = vadd.f32 %v1286_v35, %v4062_v42 }
 0x1fc   : > { %v1249_v61 = vpop.f32.mrf.mxu0 }
 0x1fd   : > { %v2887_v44 = vmul.f32 -1.442695, %v1292_v45  ;;  %v1289_v11 = vpop.f32.mrf.mxu1  ;;  %v1299_v22 = vadd.f32 %v1248_v3, %v4004_v20 }
 0x1fe   : > { %v1250_v60 = vpop.f32.mrf.mxu0 }
 0x1ff   : > { %3449 = vpow2.f32 %v2887_v44  ;;  %v3187_v33 = vpop.f32.mrf.mxu1  ;;  %v2888_v59 = vmul.f32 -1.442695, %v1299_v22 }
 0x201   : > { %3451 = vpow2.f32 %v2888_v59 }
 0x20c   : > { %v3450_v58 = vpop.eup %3449 }
 0x20d   : > { %v1296_v27 = vadd.f32 1.0, %v3450_v58 }
 0x20e   : > { %v3452_v62 = vpop.eup %3451 }
 0x20f   : > { %3453 = vrcp.f32 %v1296_v27  ;;  %v1303_v63 = vadd.f32 1.0, %v3452_v62 }
 0x211   : > { %3455 = vrcp.f32 %v1303_v63 }
 0x21c   : > { %v3454_v0 = vpop.eup %3453 }
 0x21d   : > { %v1306_v4 = vmul.f32 %v3454_v0, %v1287_v13 }
 0x21e   : > { %v3456_v2 = vpop.eup %3455 }
 0x21f   : > { %v1307_v1 = vadd.f32 %v1306_v4, %v4012_v29  ;;  %v1309_v45 = vsub.f32 1.0, %v3456_v2  ;;  %v1311_v20 = vmul.f32 %v3456_v2, %v4067_v34 }
 0x221   : > { %3457 = vtanh.f32 %v1307_v1 }
 0x22e   : > { %v3458_v5 = vpop.eup %3457 }
 0x22f   : > { %v1310_v61 = vmul.f32 %v3458_v5, %v1309_v45 }
 0x231   : > { %v4117_v44 = vadd.f32 %v1311_v20, %v1310_v61 }
 0x233   : > { %v1952_v3 = vmul.f32 %v4069_v37, %v4117_v44  ;;  %v1316_v35 = vpack.c.bf16 %v4117_v44, %v4117_v44 }
 0x235   : > { %1953 = vadd.xlane.f32.xlu0 %v1952_v3  ;;  %1350 = vmatmul.mubr.bf16.vlgmr.msra.gmra.mxu0 %v1316_v35 }
 0x236   : > { %3205 = vmatmul.mubr.bf16.vlgmr.msra.gmra.mxu1 %v1316_v35  ;;  %1424 = vmatpush1.bf16.msra.mxu0 %v3738_v9 }
 0x237   : > { %3209 = vmatpush3.bf16.msra.mxu1 %v3883_v50  ;;  %1425 = vmatprep.subr.bf16.mxu0 %v3744_v10 }
 0x238   : > { %3210 = vmatprep.subr.bf16.mxu1 %v4741_v16  ;;  %1455 = vmatprep.mubr.bf16.mxu0 %v4742_v19 }
 0x239   : > { %3224 = vmatprep.mubr.msk.bf16.mxu1 %vm3601_vm1, %v4741_v16 }
 0x23a   : > { %1426 = vmatpush1.bf16.msra.mxu0 %v3753_v12 }
 0x23b   : > { %3211 = vmatpush3.bf16.msra.mxu1 %v3893_v51  ;;  %1427 = vmatprep.subr.bf16.mxu0 %v3764_v14 }
 0x23c   : > { %3212 = vmatprep.subr.bf16.mxu1 %v4741_v16 }
 0x23e   : > { %1428 = vmatpush1.bf16.msra.mxu0 %v3774_v17 }
 0x23f   : > { %3213 = vmatpush3.bf16.msra.mxu1 %v3904_v52  ;;  %1429 = vmatprep.subr.bf16.mxu0 %v3780_v18 }
 0x240   : > { %3214 = vmatprep.subr.bf16.mxu1 %v4741_v16 }
 0x242   : > { %1430 = vmatpush1.bf16.msra.mxu0 %v3795_v21 }
 0x243   : > { %3215 = vmatpush3.bf16.msra.mxu1 %v3914_v53  ;;  %1431 = vmatprep.subr.bf16.mxu0 %v3812_v26 }
 0x244   : > { %3216 = vmatprep.subr.bf16.mxu1 %v4741_v16 }
 0x246   : > { %1432 = vmatpush1.bf16.msra.mxu0 %v3822_v30 }
 0x247   : > { %3217 = vmatpush3.bf16.msra.mxu1 %v3924_v54  ;;  %1433 = vmatprep.subr.bf16.mxu0 %v3828_v31 }
 0x248   : > { %3218 = vmatprep.subr.bf16.mxu1 %v4741_v16 }
 0x24a   : > { %1434 = vmatpush1.bf16.msra.mxu0 %v3847_v41 }
 0x24b   : > { %3219 = vmatpush3.bf16.msra.mxu1 %v3933_v55  ;;  %1435 = vmatprep.subr.bf16.mxu0 %v3854_v43 }
 0x24c   : > { %3220 = vmatprep.subr.bf16.mxu1 %v4741_v16 }
 0x24e   : > { %1436 = vmatpush1.bf16.msra.mxu0 %v3867_v46 }
 0x24f   : > { %3221 = vmatpush3.bf16.msra.mxu1 %v3942_v56  ;;  %1437 = vmatprep.subr.bf16.mxu0 %v3873_v47 }
 0x250   : > { %3222 = vmatprep.subr.bf16.mxu1 %v4741_v16 }
 0x252   : > { %1438 = vmatpush1.bf16.msra.mxu0 %v3878_v48 }
 0x253   : > { %3223 = vmatpush3.bf16.msra.mxu1 %v3951_v57  ;;  %1529 = vmatprep.subr.bf16.mxu0 %v3729_v7 }
 0x254   : > { %3228 = vmatprep.subr.bf16.mxu1 %v4741_v16 }
 0x2f5   : > { %v1351_v9 = vpop.f32.mrf.mxu0 }
 0x2f6   : > { %v1352_v10 = vadd.f32 %v1351_v9, %v4051_v28  ;;  %v1392_v12 = vpop.f32.mrf.mxu1  ;;  %v4181_v9 = vld [vmem:[%s4713_s8 + $0x94] ss:$12 sps:$4 sm:$0xff]  }
 0x2f7   : > { %v1353_v14 = vpop.f32.mrf.mxu0 }
 0x2f8   : > { %v1398_v17 = vadd.f32 %v1352_v10, %v4009_v25  ;;  %v3206_v18 = vpop.f32.mrf.mxu1  ;;  %v1354_v60 = vadd.f32 %v1353_v14, %v4056_v38  ;;  %v1393_v25 = vadd.f32 %v1392_v12, %v4062_v42  ;;  %v4191_v10 = vld [vmem:[%s4713_s8 + $0x90] ss:$12 sps:$4 sm:$0xff]   ;;  %v4205_v14 = vld [vmem:[%s4713_s8 + $0x78] ss:$12 sps:$4 sm:$0xff]  }
 0x2f9   : > { %v1355_v29 = vpop.f32.mrf.mxu0  ;;  %v4198_v12 = vld [vmem:[%s4713_s8 + $0x7c] ss:$12 sps:$4 sm:$0xff]  }
 0x2fa   : > { %v2889_v11 = vmul.f32 -1.442695, %v1398_v17  ;;  %v1395_v33 = vpop.f32.mrf.mxu1  ;;  %v1405_v7 = vadd.f32 %v1354_v60, %v4014_v32  ;;  %v4212_v17 = vld [vmem:[%s4713_s8 + $0x64] ss:$12 sps:$4 sm:$0xff]  }
 0x2fb   : > { %v1356_v22 = vpop.f32.mrf.mxu0 }
 0x2fc   : > { %3459 = vpow2.f32 %v2889_v11  ;;  %v3207_v59 = vpop.f32.mrf.mxu1  ;;  %v2890_v58 = vmul.f32 -1.442695, %v1405_v7 }
 0x2fe   : > { %3461 = vpow2.f32 %v2890_v58 }
 0x309   : > { %v3460_v27 = vpop.eup %3459 }
 0x30a   : > { %v1402_v62 = vadd.f32 1.0, %v3460_v27 }
 0x30b   : > { %v3462_v63 = vpop.eup %3461 }
 0x30c   : > { %3463 = vrcp.f32 %v1402_v62  ;;  %v1409_v13 = vadd.f32 1.0, %v3462_v63 }
 0x30e   : > { %3465 = vrcp.f32 %v1409_v13 }
 0x319   : > { %v3464_v0 = vpop.eup %3463 }
 0x31a   : > { %v1412_v4 = vmul.f32 %v3464_v0, %v1393_v25 }
 0x31b   : > { %v3466_v2 = vpop.eup %3465 }
 0x31c   : > { %v1413_v1 = vadd.f32 %v1412_v4, %v3998_v8  ;;  %v1415_v45 = vsub.f32 1.0, %v3466_v2  ;;  %v1417_v32 = vmul.f32 %v3466_v2, %v4117_v44  ;;  %v4174_v8 = vld [vmem:[%s4713_s8 + $0xa8] ss:$12 sps:$4 sm:$0xff]  }
 0x31e   : > { %3467 = vtanh.f32 %v1413_v1 }
 0x32b   : > { %v3468_v5 = vpop.eup %3467 }
 0x32c   : > { %v1416_v61 = vmul.f32 %v3468_v5, %v1415_v45 }
 0x32e   : > { %v4165_v20 = vadd.f32 %v1417_v32, %v1416_v61  ;;  %v4314_v61 = vld [vmem:[%s4713_s8 + $0x18] ss:$12 sps:$4 sm:$0xff]  }
 0x32f   : > { %v4321_v32 = vld [vmem:[%s4713_s8 + $0x4] ss:$12 sps:$4 sm:$0xff]  }
 0x330   : > { %v1955_v3 = vmul.f32 %v4069_v37, %v4165_v20  ;;  %v1422_v35 = vpack.c.bf16 %v4165_v20, %v4165_v20 }
 0x332   : > { %1956 = vadd.xlane.f32.xlu1 %v1955_v3  ;;  %1456 = vmatmul.mubr.bf16.vlgmr.msra.gmra.mxu0 %v1422_v35  ;;  %v4328_v3 = vld [vmem:[%s4713_s8] ss:$12 sps:$4 sm:$0xff]  }
 0x333   : > { %3225 = vmatmul.mubr.bf16.vlgmr.msra.gmra.mxu1 %v1422_v35  ;;  %1530 = vmatpush1.bf16.msra.mxu0 %v4174_v8 }
 0x334   : > { %3229 = vmatpush3.bf16.msra.mxu1 %v3883_v50  ;;  %1531 = vmatprep.subr.bf16.mxu0 %v4181_v9 }
 0x335   : > { %3230 = vmatprep.subr.bf16.mxu1 %v4741_v16  ;;  %1561 = vmatprep.mubr.bf16.mxu0 %v4742_v19 }
 0x336   : > { %3244 = vmatprep.mubr.msk.bf16.mxu1 %vm3601_vm1, %v4741_v16 }
 0x337   : > { %1532 = vmatpush1.bf16.msra.mxu0 %v4191_v10 }
 0x338   : > { %3231 = vmatpush3.bf16.msra.mxu1 %v3893_v51  ;;  %1533 = vmatprep.subr.bf16.mxu0 %v4198_v12 }
 0x339   : > { %3232 = vmatprep.subr.bf16.mxu1 %v4741_v16 }
 0x33b   : > { %1534 = vmatpush1.bf16.msra.mxu0 %v4205_v14 }
 0x33c   : > { %3233 = vmatpush3.bf16.msra.mxu1 %v3904_v52  ;;  %1535 = vmatprep.subr.bf16.mxu0 %v4212_v17 }
 0x33d   : > { %3234 = vmatprep.subr.bf16.mxu1 %v4741_v16 }
 0x33f   : > { %1536 = vmatpush1.bf16.msra.mxu0 %v3795_v21  ;;  %v4237_v21 = vld [vmem:[%s4713_s8 + $0xac] ss:$12 sps:$4 sm:$0xff]  }
 0x340   : > { %3235 = vmatpush3.bf16.msra.mxu1 %v3914_v53  ;;  %1537 = vmatprep.subr.bf16.mxu0 %v3812_v26 }
 0x341   : > { %3236 = vmatprep.subr.bf16.mxu1 %v4741_v16 }
 0x343   : > { %1538 = vmatpush1.bf16.msra.mxu0 %v3822_v30 }
 0x344   : > { %3237 = vmatpush3.bf16.msra.mxu1 %v3924_v54  ;;  %1539 = vmatprep.subr.bf16.mxu0 %v3828_v31 }
 0x345   : > { %3238 = vmatprep.subr.bf16.mxu1 %v4741_v16 }
 0x347   : > { %1540 = vmatpush1.bf16.msra.mxu0 %v3847_v41 }
 0x348   : > { %3239 = vmatpush3.bf16.msra.mxu1 %v3933_v55  ;;  %1541 = vmatprep.subr.bf16.mxu0 %v3854_v43 }
 0x349   : > { %3240 = vmatprep.subr.bf16.mxu1 %v4741_v16 }
 0x34b   : > { %1542 = vmatpush1.bf16.msra.mxu0 %v3867_v46 }
 0x34c   : > { %3241 = vmatpush3.bf16.msra.mxu1 %v3942_v56  ;;  %1543 = vmatprep.subr.bf16.mxu0 %v3873_v47 }
 0x34d   : > { %3242 = vmatprep.subr.bf16.mxu1 %v4741_v16 }
 0x34f   : > { %1544 = vmatpush1.bf16.msra.mxu0 %v3878_v48 }
 0x350   : > { %3243 = vmatpush3.bf16.msra.mxu1 %v3951_v57  ;;  %1635 = vmatprep.subr.bf16.mxu0 %v4237_v21 }
 0x351   : > { %3248 = vmatprep.subr.bf16.mxu1 %v4741_v16 }
 0x3f2   : > { %v1457_v26 = vpop.f32.mrf.mxu0 }
 0x3f3   : > { %v1458_v30 = vadd.f32 %v1457_v26, %v4051_v28  ;;  %v1498_v31 = vpop.f32.mrf.mxu1 }
 0x3f4   : > { %v1459_v41 = vpop.f32.mrf.mxu0 }
 0x3f5   : > { %v1504_v43 = vadd.f32 %v1458_v30, %v4019_v36  ;;  %v3226_v46 = vpop.f32.mrf.mxu1  ;;  %v1460_v18 = vadd.f32 %v1459_v41, %v4056_v38  ;;  %v1499_v36 = vadd.f32 %v1498_v31, %v4062_v42 }
 0x3f6   : > { %v1461_v47 = vpop.f32.mrf.mxu0 }
 0x3f7   : > { %v2891_v48 = vmul.f32 -1.442695, %v1504_v43  ;;  %v1501_v29 = vpop.f32.mrf.mxu1  ;;  %v1511_v33 = vadd.f32 %v1460_v18, %v4024_v40 }
 0x3f8   : > { %v1462_v11 = vpop.f32.mrf.mxu0 }
 0x3f9   : > { %3469 = vpow2.f32 %v2891_v48  ;;  %v3227_v60 = vpop.f32.mrf.mxu1  ;;  %v2892_v22 = vmul.f32 -1.442695, %v1511_v33 }
 0x3fb   : > { %3471 = vpow2.f32 %v2892_v22 }
 0x406   : > { %v3470_v59 = vpop.eup %3469 }
 0x407   : > { %v1508_v7 = vadd.f32 1.0, %v3470_v59 }
 0x408   : > { %v3472_v58 = vpop.eup %3471 }
 0x409   : > { %3473 = vrcp.f32 %v1508_v7  ;;  %v1515_v27 = vadd.f32 1.0, %v3472_v58 }
 0x40b   : > { %3475 = vrcp.f32 %v1515_v27 }
 0x416   : > { %v3474_v62 = vpop.eup %3473 }
 0x417   : > { %v1518_v63 = vmul.f32 %v3474_v62, %v1499_v36 }
 0x418   : > { %v3476_v25 = vpop.eup %3475 }
 0x419   : > { %v1519_v13 = vadd.f32 %v1518_v63, %v4007_v24  ;;  %v1521_v0 = vsub.f32 1.0, %v3476_v25  ;;  %v1523_v40 = vmul.f32 %v3476_v25, %v4165_v20  ;;  %v4300_v24 = vld [vmem:[%s4713_s8 + $0x30] ss:$12 sps:$4 sm:$0xff]  }
 0x41b   : > { %3477 = vtanh.f32 %v1519_v13 }
 0x428   : > { %v3478_v4 = vpop.eup %3477 }
 0x429   : > { %v1522_v1 = vmul.f32 %v3478_v4, %v1521_v0 }
 0x42b   : > { %v4248_v2 = vadd.f32 %v1523_v40, %v1522_v1 }
 0x42d   : > { %v1958_v45 = vmul.f32 %v4069_v37, %v4248_v2  ;;  %v1528_v5 = vpack.c.bf16 %v4248_v2, %v4248_v2 }
 0x42f   : > { %1959 = vadd.xlane.f32.xlu1 %v1958_v45  ;;  %1562 = vmatmul.mubr.bf16.vlgmr.msra.gmra.mxu0 %v1528_v5  ;;  %v4363_v45 = vld [vmem:[%s4713_s8 + $0x98] ss:$12 sps:$4 sm:$0xff]  }
 0x430   : > { %3245 = vmatmul.mubr.bf16.vlgmr.msra.gmra.mxu1 %v1528_v5  ;;  %1636 = vmatpush1.bf16.msra.mxu0 %v4174_v8  ;;  %v4372_v5 = vld [vmem:[%s4713_s8 + $0x80] ss:$12 sps:$4 sm:$0xff]  }
 0x431   : > { %3249 = vmatpush3.bf16.msra.mxu1 %v3883_v50  ;;  %1637 = vmatprep.subr.bf16.mxu0 %v4181_v9  ;;  %v4272_v50 = vld [vmem:[%s4713_s8 + $0x60] ss:$12 sps:$4 sm:$0xff]  }
 0x432   : > { %3250 = vmatprep.subr.bf16.mxu1 %v4741_v16  ;;  %1667 = vmatprep.mubr.bf16.mxu0 %v4742_v19 }
 0x433   : > { %3264 = vmatprep.mubr.msk.bf16.mxu1 %vm3601_vm1, %v4741_v16 }
 0x434   : > { %1638 = vmatpush1.bf16.msra.mxu0 %v4191_v10 }
 0x435   : > { %3251 = vmatpush3.bf16.msra.mxu1 %v3893_v51  ;;  %1639 = vmatprep.subr.bf16.mxu0 %v4198_v12  ;;  %v4279_v51 = vld [vmem:[%s4713_s8 + $0x4c] ss:$12 sps:$4 sm:$0xff]  }
 0x436   : > { %3252 = vmatprep.subr.bf16.mxu1 %v4741_v16 }
 0x438   : > { %1640 = vmatpush1.bf16.msra.mxu0 %v4205_v14 }
 0x439   : > { %3253 = vmatpush3.bf16.msra.mxu1 %v3904_v52  ;;  %1641 = vmatprep.subr.bf16.mxu0 %v4212_v17  ;;  %v4286_v52 = vld [vmem:[%s4713_s8 + $0x48] ss:$12 sps:$4 sm:$0xff]  }
 0x43a   : > { %3254 = vmatprep.subr.bf16.mxu1 %v4741_v16 }
 0x43c   : > { %1642 = vmatpush1.bf16.msra.mxu0 %v4272_v50 }
 0x43d   : > { %3255 = vmatpush3.bf16.msra.mxu1 %v3914_v53  ;;  %1643 = vmatprep.subr.bf16.mxu0 %v4279_v51  ;;  %v4293_v53 = vld [vmem:[%s4713_s8 + $0x34] ss:$12 sps:$4 sm:$0xff]  }
 0x43e   : > { %3256 = vmatprep.subr.bf16.mxu1 %v4741_v16 }
 0x440   : > { %1644 = vmatpush1.bf16.msra.mxu0 %v4286_v52 }
 0x441   : > { %3257 = vmatpush3.bf16.msra.mxu1 %v3924_v54  ;;  %1645 = vmatprep.subr.bf16.mxu0 %v4293_v53  ;;  %v4307_v54 = vld [vmem:[%s4713_s8 + $0x1c] ss:$12 sps:$4 sm:$0xff]  }
 0x442   : > { %3258 = vmatprep.subr.bf16.mxu1 %v4741_v16 }
 0x444   : > { %1646 = vmatpush1.bf16.msra.mxu0 %v4300_v24 }
 0x445   : > { %3259 = vmatpush3.bf16.msra.mxu1 %v3933_v55  ;;  %1647 = vmatprep.subr.bf16.mxu0 %v4307_v54 }
 0x446   : > { %3260 = vmatprep.subr.bf16.mxu1 %v4741_v16 }
 0x448   : > { %1648 = vmatpush1.bf16.msra.mxu0 %v4314_v61 }
 0x449   : > { %3261 = vmatpush3.bf16.msra.mxu1 %v3942_v56  ;;  %1649 = vmatprep.subr.bf16.mxu0 %v4321_v32 }
 0x44a   : > { %3262 = vmatprep.subr.bf16.mxu1 %v4741_v16 }
 0x44c   : > { %1650 = vmatpush1.bf16.msra.mxu0 %v4328_v3 }
 0x44d   : > { %3263 = vmatpush3.bf16.msra.mxu1 %v3951_v57  ;;  %1741 = vmatprep.subr.bf16.mxu0 %v4237_v21 }
 0x44e   : > { %3268 = vmatprep.subr.bf16.mxu1 %v4741_v16 }
 0x4ef   : > { %v1563_v35 = vpop.f32.mrf.mxu0 }
 0x4f0   : > { %v1564_v26 = vadd.f32 %v1563_v35, %v4051_v28  ;;  %v1604_v30 = vpop.f32.mrf.mxu1  ;;  %v4381_v35 = vld [vmem:[%s4713_s8 + $0x68] ss:$12 sps:$4 sm:$0xff]  }
 0x4f1   : > { %v1565_v31 = vpop.f32.mrf.mxu0 }
 0x4f2   : > { %v1610_v41 = vadd.f32 %v1564_v26, %v4029_v49  ;;  %v3246_v43 = vpop.f32.mrf.mxu1  ;;  %v1566_v48 = vadd.f32 %v1565_v31, %v4056_v38  ;;  %v1605_v49 = vadd.f32 %v1604_v30, %v4062_v42  ;;  %v4390_v26 = vld [vmem:[%s4713_s8 + $0x50] ss:$12 sps:$4 sm:$0xff]  }
 0x4f3   : > { %v1567_v46 = vpop.f32.mrf.mxu0 }
 0x4f4   : > { %v2893_v47 = vmul.f32 -1.442695, %v1610_v41  ;;  %v1607_v18 = vpop.f32.mrf.mxu1  ;;  %v1617_v60 = vadd.f32 %v1566_v48, %v4034_v6 }
 0x4f5   : > { %v1568_v29 = vpop.f32.mrf.mxu0 }
 0x4f6   : > { %3479 = vpow2.f32 %v2893_v47  ;;  %v3247_v11 = vpop.f32.mrf.mxu1  ;;  %v2894_v33 = vmul.f32 -1.442695, %v1617_v60 }
 0x4f7   : > { %v4743_v11 = vld [vmem:[#allocation8_spill] sm:$0xff] }
 0x4f8   : > { %3481 = vpow2.f32 %v2894_v33 }
 0x503   : > { %v3480_v22 = vpop.eup %3479 }
 0x504   : > { %v1614_v59 = vadd.f32 1.0, %v3480_v22 }
 0x505   : > { %v3482_v7 = vpop.eup %3481 }
 0x506   : > { %3483 = vrcp.f32 %v1614_v59  ;;  %v1621_v58 = vadd.f32 1.0, %v3482_v7 }
 0x508   : > { %3485 = vrcp.f32 %v1621_v58 }
 0x513   : > { %v3484_v27 = vpop.eup %3483 }
 0x514   : > { %v1624_v36 = vmul.f32 %v3484_v27, %v1605_v49  ;;  %v4744_v27 = vld [vmem:[#allocation7_spill] sm:$0xff] }
 0x515   : > { %v3486_v63 = vpop.eup %3485 }
 0x516   : > { %v1625_v62 = vadd.f32 %v1624_v36, %v4022_v39  ;;  %v1627_v13 = vsub.f32 1.0, %v3486_v63  ;;  %v1629_v6 = vmul.f32 %v3486_v63, %v4248_v2  ;;  %v4351_v39 = vld [vmem:[%s4713_s8 + $0xb0] ss:$12 sps:$4 sm:$0xff]  }
 0x518   : > { %3487 = vtanh.f32 %v1625_v62 }
 0x525   : > { %v3488_v25 = vpop.eup %3487 }
 0x526   : > { %v1628_v0 = vmul.f32 %v3488_v25, %v1627_v13 }
 0x528   : > { %v4341_v4 = vadd.f32 %v1629_v6, %v1628_v0 }
 0x52a   : > { %v1961_v1 = vmul.f32 %v4069_v37, %v4341_v4  ;;  %v1634_v40 = vpack.c.bf16 %v4341_v4, %v4341_v4 }
 0x52c   : > { %1962 = vadd.xlane.f32.xlu0 %v1961_v1  ;;  %1668 = vmatmul.mubr.bf16.vlgmr.msra.gmra.mxu0 %v1634_v40 }
 0x52d   : > { %3265 = vmatmul.mubr.bf16.vlgmr.msra.gmra.mxu1 %v1634_v40  ;;  %1742 = vmatpush1.bf16.msra.mxu0 %v4174_v8 }
 0x52e   : > { %3269 = vmatpush3.bf16.msra.mxu1 %v4351_v39  ;;  %1743 = vmatprep.subr.bf16.mxu0 %v4181_v9 }
 0x52f   : > { %3270 = vmatprep.subr.bf16.mxu1 %v4741_v16  ;;  %1773 = vmatprep.mubr.bf16.mxu0 %v4742_v19 }
 0x530   : > { %3284 = vmatprep.mubr.msk.bf16.mxu1 %vm3601_vm1, %v4741_v16 }
 0x531   : > { %1744 = vmatpush1.bf16.msra.mxu0 %v4191_v10 }
 0x532   : > { %3271 = vmatpush3.bf16.msra.mxu1 %v4363_v45  ;;  %1745 = vmatprep.subr.bf16.mxu0 %v4198_v12 }
 0x533   : > { %3272 = vmatprep.subr.bf16.mxu1 %v4741_v16 }
 0x535   : > { %1746 = vmatpush1.bf16.msra.mxu0 %v4205_v14 }
 0x536   : > { %3273 = vmatpush3.bf16.msra.mxu1 %v4372_v5  ;;  %1747 = vmatprep.subr.bf16.mxu0 %v4212_v17 }
 0x537   : > { %3274 = vmatprep.subr.bf16.mxu1 %v4741_v16 }
 0x539   : > { %1748 = vmatpush1.bf16.msra.mxu0 %v4272_v50 }
 0x53a   : > { %3275 = vmatpush3.bf16.msra.mxu1 %v4381_v35  ;;  %1749 = vmatprep.subr.bf16.mxu0 %v4279_v51 }
 0x53b   : > { %3276 = vmatprep.subr.bf16.mxu1 %v4741_v16 }
 0x53d   : > { %1750 = vmatpush1.bf16.msra.mxu0 %v4286_v52 }
 0x53e   : > { %3277 = vmatpush3.bf16.msra.mxu1 %v4390_v26  ;;  %1751 = vmatprep.subr.bf16.mxu0 %v4293_v53 }
 0x53f   : > { %3278 = vmatprep.subr.bf16.mxu1 %v4741_v16 }
 0x541   : > { %1752 = vmatpush1.bf16.msra.mxu0 %v4300_v24 }
 0x542   : > { %3279 = vmatpush3.bf16.msra.mxu1 %v3933_v55  ;;  %1753 = vmatprep.subr.bf16.mxu0 %v4307_v54 }
 0x543   : > { %3280 = vmatprep.subr.bf16.mxu1 %v4741_v16 }
 0x545   : > { %1754 = vmatpush1.bf16.msra.mxu0 %v4314_v61 }
 0x546   : > { %3281 = vmatpush3.bf16.msra.mxu1 %v3942_v56  ;;  %1755 = vmatprep.subr.bf16.mxu0 %v4321_v32 }
 0x547   : > { %3282 = vmatprep.subr.bf16.mxu1 %v4741_v16 }
 0x549   : > { %1756 = vmatpush1.bf16.msra.mxu0 %v4328_v3 }
 0x54a   : > { %3283 = vmatpush3.bf16.msra.mxu1 %v3951_v57  ;;  %1847 = vmatprep.subr.bf16.mxu0 %v4237_v21 }
 0x54b   : > { %3288 = vmatprep.subr.bf16.mxu1 %v4741_v16 }
 0x5ec   : > { %v1669_v55 = vpop.f32.mrf.mxu0 }
 0x5ed   : > { %v1670_v30 = vadd.f32 %v1669_v55, %v4051_v28  ;;  %v1710_v31 = vpop.f32.mrf.mxu1 }
 0x5ee   : > { %v1671_v41 = vpop.f32.mrf.mxu0 }
 0x5ef   : > { %v1716_v43 = vadd.f32 %v1670_v30, %v4036_v23  ;;  %v3266_v56 = vpop.f32.mrf.mxu1  ;;  %v1672_v48 = vadd.f32 %v1671_v41, %v4056_v38  ;;  %v1711_v23 = vadd.f32 %v1710_v31, %v4062_v42 }
 0x5f0   : > { %v1673_v46 = vpop.f32.mrf.mxu0 }
 0x5f1   : > { %v2895_v47 = vmul.f32 -1.442695, %v1716_v43  ;;  %v1713_v18 = vpop.f32.mrf.mxu1  ;;  %v1723_v21 = vadd.f32 %v1672_v48, %v4743_v11  ;;  %v4747_v43 = vld [vmem:[#allocation5_spill] sm:$0xff]  ;;  %v4748_v46 = vld [vmem:[#allocation11_spill] sm:$0xff] }
 0x5f2   : > { %v1674_v29 = vpop.f32.mrf.mxu0 }
 0x5f3   : > { %3489 = vpow2.f32 %v2895_v47  ;;  %v3267_v57 = vpop.f32.mrf.mxu1  ;;  %v2896_v60 = vmul.f32 -1.442695, %v1723_v21 }
 0x5f5   : > { %3491 = vpow2.f32 %v2896_v60 }
 0x600   : > { %v3490_v33 = vpop.eup %3489 }
 0x601   : > { %v1720_v22 = vadd.f32 1.0, %v3490_v33  ;;  %v2132_v33 = vpack.c.bf16 %v4069_v37, %v4069_v37 }
 0x602   : > { %v3492_v59 = vpop.eup %3491 }
 0x603   : > { %3493 = vrcp.f32 %v1720_v22  ;;  %v1727_v7 = vadd.f32 1.0, %v3492_v59 }
 0x605   : > { %3495 = vrcp.f32 %v1727_v7 }
 0x610   : > { %v3494_v58 = vpop.eup %3493 }
 0x611   : > { %v1730_v49 = vmul.f32 %v3494_v58, %v1711_v23 }
 0x612   : > { %v3496_v62 = vpop.eup %3495 }
 0x613   : > { %v1731_v36 = vadd.f32 %v1730_v49, %v4744_v27  ;;  %v1733_v63 = vsub.f32 1.0, %v3496_v62  ;;  %v1735_v0 = vmul.f32 %v3496_v62, %v4341_v4 }
 0x615   : > { %3497 = vtanh.f32 %v1731_v36 }
 0x622   : > { %v3498_v13 = vpop.eup %3497 }
 0x623   : > { %v1734_v25 = vmul.f32 %v3498_v13, %v1733_v63 }
 0x625   : > { %v4414_v6 = vadd.f32 %v1735_v0, %v1734_v25 }
 0x627   : > { %v1964_v1 = vmul.f32 %v4069_v37, %v4414_v6  ;;  %v1740_v40 = vpack.c.bf16 %v4414_v6, %v4414_v6 }
 0x629   : > { %1965 = vadd.xlane.f32.xlu1 %v1964_v1  ;;  %1774 = vmatmul.mubr.bf16.vlgmr.msra.gmra.mxu0 %v1740_v40 }
 0x62a   : > { %3285 = vmatmul.mubr.bf16.vlgmr.msra.gmra.mxu1 %v1740_v40  ;;  %1848 = vmatpush1.bf16.msra.mxu0 %v4174_v8  ;;  %v3581_v8 = vld [vmem:[%s4713_s8 + $0x20] ss:$12 sps:$4 sm:$0xff]  }
 0x62b   : > { %3289 = vmatpush3.bf16.msra.mxu1 %v4351_v39  ;;  %1849 = vmatprep.subr.bf16.mxu0 %v4181_v9  ;;  %v3582_v9 = vld [vmem:[%s4713_s8 + $0x8] ss:$12 sps:$4 sm:$0xff]  }
 0x62c   : > { %3290 = vmatprep.subr.bf16.mxu1 %v4741_v16  ;;  %1879 = vmatprep.mubr.bf16.mxu0 %v4742_v19  ;;  %v3580_v19 = vld [vmem:[%s4713_s8 + $0x38] ss:$12 sps:$4 sm:$0xff]  }
 0x62d   : > { %3304 = vmatprep.mubr.msk.bf16.mxu1 %vm3601_vm1, %v4741_v16 }
 0x62e   : > { %1850 = vmatpush1.bf16.msra.mxu0 %v4191_v10 }
 0x62f   : > { %3291 = vmatpush3.bf16.msra.mxu1 %v4363_v45  ;;  %1851 = vmatprep.subr.bf16.mxu0 %v4198_v12 }
 0x630   : > { %3292 = vmatprep.subr.bf16.mxu1 %v4741_v16 }
 0x632   : > { %1852 = vmatpush1.bf16.msra.mxu0 %v4205_v14 }
 0x633   : > { %3293 = vmatpush3.bf16.msra.mxu1 %v4372_v5  ;;  %1853 = vmatprep.subr.bf16.mxu0 %v4212_v17 }
 0x634   : > { %3294 = vmatprep.subr.bf16.mxu1 %v4741_v16 }
 0x636   : > { %1854 = vmatpush1.bf16.msra.mxu0 %v4272_v50  ;;  %v4745_v50 = vld [vmem:[#allocation9_spill] sm:$0xff] }
 0x637   : > { %3295 = vmatpush3.bf16.msra.mxu1 %v4381_v35  ;;  %1855 = vmatprep.subr.bf16.mxu0 %v4279_v51 }
 0x638   : > { %3296 = vmatprep.subr.bf16.mxu1 %v4741_v16 }
 0x63a   : > { %1856 = vmatpush1.bf16.msra.mxu0 %v4286_v52 }
 0x63b   : > { %3297 = vmatpush3.bf16.msra.mxu1 %v4390_v26  ;;  %1857 = vmatprep.subr.bf16.mxu0 %v4293_v53 }
 0x63c   : > { %3298 = vmatprep.subr.bf16.mxu1 %v4741_v16 }
 0x63e   : > { %1858 = vmatpush1.bf16.msra.mxu0 %v4300_v24 }
 0x63f   : > { %3299 = vmatpush3.bf16.msra.mxu1 %v3580_v19  ;;  %1859 = vmatprep.subr.bf16.mxu0 %v4307_v54 }
 0x640   : > { %3300 = vmatprep.subr.bf16.mxu1 %v4741_v16 }
 0x642   : > { %1860 = vmatpush1.bf16.msra.mxu0 %v4314_v61 }
 0x643   : > { %3301 = vmatpush3.bf16.msra.mxu1 %v3581_v8  ;;  %1861 = vmatprep.subr.bf16.mxu0 %v4321_v32 }
 0x644   : > { %3302 = vmatprep.subr.bf16.mxu1 %v4741_v16 }
 0x646   : > { %1862 = vmatpush1.bf16.msra.mxu0 %v4328_v3  ;;  %v4746_v3 = vld [vmem:[#allocation10_spill] sm:$0xff] }
 0x647   : > { %3303 = vmatpush3.bf16.msra.mxu1 %v3582_v9  ;;  %v4749_v9 = vld [vmem:[#allocation12_spill] sm:$0xff] }
 0x6e9   : > { %v1775_v10 = vpop.f32.mrf.mxu0 }
 0x6ea   : > { %v1776_v12 = vadd.f32 %v1775_v10, %v4051_v28  ;;  %v1816_v14 = vpop.f32.mrf.mxu1 }
 0x6eb   : > { %v1777_v17 = vpop.f32.mrf.mxu0  ;;  %v1817_v30 = vadd.f32 %v1816_v14, %v4062_v42 }
 0x6ec   : > { %v1822_v51 = vadd.f32 %v1776_v12, %v4745_v50  ;;  %v3286_v52 = vpop.f32.mrf.mxu1  ;;  %v1778_v54 = vadd.f32 %v1777_v17, %v4056_v38 }
 0x6ed   : > { %v1779_v53 = vpop.f32.mrf.mxu0 }
 0x6ee   : > { %v2897_v24 = vmul.f32 -1.442695, %v1822_v51  ;;  %v1819_v16 = vpop.f32.mrf.mxu1  ;;  %v1829_v39 = vadd.f32 %v1778_v54, %v4746_v3  ;;  %v4750_v53 = vld [vmem:[#allocation6_spill] sm:$0xff] }
 0x6ef   : > { %v1780_v61 = vpop.f32.mrf.mxu0 }
 0x6f0   : > { %3499 = vpow2.f32 %v2897_v24  ;;  %v3287_v32 = vpop.f32.mrf.mxu1  ;;  %v2898_v45 = vmul.f32 -1.442695, %v1829_v39 }
 0x6f2   : > { %3501 = vpow2.f32 %v2898_v45 }
 0x6fd   : > { %v3500_v5 = vpop.eup %3499 }
 0x6fe   : > { %v1826_v35 = vadd.f32 1.0, %v3500_v5 }
 0x6ff   : > { %v3502_v26 = vpop.eup %3501 }
 0x700   : > { %3503 = vrcp.f32 %v1826_v35  ;;  %v1833_v55 = vadd.f32 1.0, %v3502_v26  ;;  %v3390_v26 = vld [vmem:[%s4718_s13 + $0x38] sm:$0xff]  }
 0x702   : > { %3505 = vrcp.f32 %v1833_v55  ;;  %v3391_v55 = vld [vmem:[%s4718_s13 + $0x70] sm:$0xff]  }
 0x70d   : > { %v3504_v31 = vpop.eup %3503 }
 0x70e   : > { %v1836_v41 = vmul.f32 %v3504_v31, %v1817_v30  ;;  %v3392_v30 = vld [vmem:[%s4718_s13 + $0x30] sm:$0xff]   ;;  %v3393_v31 = vld [vmem:[%s4718_s13 + $0x68] sm:$0xff]  }
 0x70f   : > { %v3506_v47 = vpop.eup %3505 }
 0x710   : > { %v1837_v56 = vadd.f32 %v1836_v41, %v4747_v43  ;;  %v1839_v48 = vsub.f32 1.0, %v3506_v47  ;;  %v1841_v57 = vmul.f32 %v3506_v47, %v4414_v6  ;;  %v3394_v41 = vld [vmem:[%s4718_s13 + $0x28] sm:$0xff]   ;;  %v3395_v43 = vld [vmem:[%s4718_s13 + $0x60] sm:$0xff]   ;;  %v3400_v47 = vld [vmem:[%s4718_s13 + $0xb8] sm:$0xff]  }
 0x712   : > { %3507 = vtanh.f32 %v1837_v56  ;;  %v3396_v56 = vld [vmem:[%s4718_s13 + $0x20] sm:$0xff]  }
 0x713   : > { %3509 = vtanh.f32 %v4748_v46  ;;  %v3398_v46 = vld [vmem:[%s4718_s13 + $0xf8] sm:$0xff]  }
 0x714   : > { %3067 = vmatprep.subr.bf16.mxu1 %v3398_v46 }
 0x71f   : > { %v3508_v18 = vpop.eup %3507 }
 0x720   : > { %v1840_v29 = vmul.f32 %v3508_v18, %v1839_v48  ;;  %v4475_v22 = vpop.eup %3509  ;;  %v3397_v48 = vld [vmem:[%s4718_s13 + $0x58] sm:$0xff]   ;;  %v3402_v18 = vld [vmem:[%s4718_s13 + $0xf0] sm:$0xff]  }
 0x721   : > { %v1973_v59 = vmul.f32 %v4475_v22, %v4067_v34  ;;  %v1979_v7 = vmul.f32 %v4475_v22, %v4165_v20  ;;  %v1985_v23 = vmul.f32 %v4475_v22, %v4341_v4  ;;  %v1982_v45 = vmul.f32 %v4475_v22, %v4248_v2 }
 0x722   : > { %v4467_v11 = vadd.f32 %v1841_v57, %v1840_v29  ;;  %v1988_v5 = vmul.f32 %v4475_v22, %v4414_v6  ;;  %v3404_v29 = vld [vmem:[%s4718_s13 + $0xb0] sm:$0xff]   ;;  %v3399_v57 = vld [vmem:[%s4718_s13 + $0x18] sm:$0xff]  }
 0x724   : > { %v1967_v21 = vmul.f32 %v4069_v37, %v4467_v11  ;;  %v1846_v60 = vpack.c.bf16 %v4467_v11, %v4467_v11  ;;  %v1991_v58 = vmul.f32 %v4475_v22, %v4467_v11 }
 0x726   : > { %1968 = vadd.xlane.f32.xlu0 %v1967_v21  ;;  %1880 = vmatmul.mubr.bf16.vlgmr.msra.gmra.mxu0 %v1846_v60  ;;  %v3406_v21 = vld [vmem:[%s4718_s13 + $0xe8] sm:$0xff]  }
 0x727   : > { %3305 = vmatmul.mubr.bf16.vlgmr.msra.gmra.mxu1 %v1846_v60  ;;  %v3401_v60 = vld [vmem:[%s4718_s13 + $0x50] sm:$0xff]  }
 0x728   : > { %2598 = vmatprep.mubr.bf16.mxu1 %v2132_v33  ;;  %3068 = vmatpush3.bf16.msra.mxu1 %v3400_v47  ;;  %v3408_v33 = vld [vmem:[%s4718_s13 + $0xa8] sm:$0xff]  }
 0x729   : > { %3069 = vmatprep.subr.bf16.mxu1 %v3402_v18 }
 0x72a   : > { %1974 = vadd.xlane.f32.xlu0 %v1973_v59  ;;  %v3403_v59 = vld [vmem:[%s4718_s13 + $0x10] sm:$0xff]  }
 0x72c   : > { %3070 = vmatpush3.bf16.msra.mxu1 %v3404_v29 }
 0x72d   : > { %3071 = vmatprep.subr.bf16.mxu1 %v3406_v21 }
 0x72e   : > { %1980 = vadd.xlane.f32.xlu0 %v1979_v7  ;;  %v3410_v7 = vld [vmem:[%s4718_s13 + $0xe0] sm:$0xff]  }
 0x730   : > { %3072 = vmatpush3.bf16.msra.mxu1 %v3408_v33 }
 0x731   : > { %3073 = vmatprep.subr.bf16.mxu1 %v3410_v7 }
 0x732   : > { %1986 = vadd.xlane.f32.xlu0 %v1985_v23  ;;  %v3405_v23 = vld [vmem:[%s4718_s13 + $0x48] sm:$0xff]  }
 0x736   : > { %1992 = vadd.xlane.f32.xlu0 %v1991_v58  ;;  %v3412_v58 = vld [vmem:[%s4718_s13 + $0xa0] sm:$0xff]  }
 0x737   : > { %3074 = vmatpush3.bf16.msra.mxu1 %v3412_v58 }
 0x7e6   : > { %v1881_v49 = vpop.f32.mrf.mxu0 }
 0x7e7   : > { %v1882_v27 = vadd.f32 %v1881_v49, %v4051_v28  ;;  %v1922_v36 = vpop.f32.mrf.mxu1  ;;  %v3407_v49 = vld [vmem:[%s4718_s13 + $0x8] sm:$0xff]  }
 0x7e8   : > { %v1883_v62 = vpop.f32.mrf.mxu0 }
 0x7e9   : > { %v1928_v63 = vadd.f32 %v1882_v27, %v4049_v15  ;;  %v3306_v13 = vpop.f32.mrf.mxu1  ;;  %v1884_v1 = vadd.f32 %v1883_v62, %v4056_v38  ;;  %v1923_v15 = vadd.f32 %v1922_v36, %v4062_v42  ;;  %v1976_v42 = vmul.f32 %v4475_v22, %v4117_v44  ;;  %v3409_v27 = vld [vmem:[%s4718_s13 + $0x40] sm:$0xff]   ;;  %v3413_v62 = vld [vmem:[%s4718_s13 + $0xd8] sm:$0xff]  }
 0x7ea   : > { %v1885_v25 = vpop.f32.mrf.mxu0  ;;  %v3411_v36 = vld [vmem:[%s4718_s13] sm:$0xff]   ;;  %v3415_v13 = vld [vmem:[%s4718_s13 + $0x98] sm:$0xff]   ;;  %3075 = vmatprep.subr.bf16.mxu1 %v3413_v62 }
 0x7eb   : > { %v2899_v0 = vmul.f32 -1.442695, %v1928_v63  ;;  %v1925_v40 = vpop.f32.mrf.mxu1  ;;  %v1935_v10 = vadd.f32 %v1884_v1, %v4749_v9  ;;  %v3414_v63 = vld [vmem:[%s4718_s13 + $0x178] sm:$0xff]   ;;  %v3417_v25 = vld [vmem:[%s4718_s13 + $0xd0] sm:$0xff]   ;;  %3076 = vmatpush3.bf16.msra.mxu1 %v3415_v13  ;;  %v3421_v1 = vld [vmem:[%s4718_s13 + $0xc8] sm:$0xff]   ;;  %v1951_v9 = vpop.xlane.xlu0 %1950 }
 0x7ec   : > { %v1886_v19 = vpop.f32.mrf.mxu0  ;;  %3077 = vmatprep.subr.bf16.mxu1 %v3417_v25  ;;  %v3423_v40 = vld [vmem:[%s4718_s13 + $0x88] sm:$0xff]  }
 0x7ed   : > { %3511 = vpow2.f32 %v2899_v0  ;;  %v3307_v8 = vpop.f32.mrf.mxu1  ;;  %v2900_v12 = vmul.f32 -1.442695, %v1935_v10  ;;  %v3419_v0 = vld [vmem:[%s4718_s13 + $0x90] sm:$0xff]   ;;  %v3425_v19 = vld [vmem:[%s4718_s13 + $0xc0] sm:$0xff]  }
 0x7ee   : > { %v3427_v8 = vld [vmem:[%s4718_s13 + $0x80] sm:$0xff]  }
 0x7ef   : > { %3513 = vpow2.f32 %v2900_v12  ;;  %3078 = vmatpush3.bf16.msra.mxu1 %v3419_v0  ;;  %v1954_v10 = vpop.xlane.xlu0 %1953  ;;  %v1957_v12 = vpop.xlane.xlu1 %1956 }
 0x7f0   : > { %3079 = vmatprep.subr.bf16.mxu1 %v3421_v1 }
 0x7f3   : > { %3080 = vmatpush3.bf16.msra.mxu1 %v3423_v40 }
 0x7f4   : > { %3081 = vmatprep.subr.bf16.mxu1 %v3425_v19 }
 0x7f7   : > { %3082 = vmatpush3.bf16.msra.mxu1 %v3427_v8 }
 0x7fa   : > { %v3512_v14 = vpop.eup %3511 }
 0x7fb   : > { %v1932_v17 = vadd.f32 1.0, %v3512_v14  ;;  %v1963_v14 = vpop.xlane.xlu0 %1962 }
 0x7fc   : > { %v3514_v28 = vpop.eup %3513 }
 0x7fd   : > { %3515 = vrcp.f32 %v1932_v17  ;;  %v1939_v50 = vadd.f32 1.0, %v3514_v28  ;;  %v1997_v17 = vmax.f32 %v1951_v9, %v1954_v10  ;;  %v1960_v28 = vpop.xlane.xlu1 %1959 }
 0x7ff   : > { %3517 = vrcp.f32 %v1939_v50  ;;  %v1969_v50 = vpop.xlane.xlu0 %1968 }
 0x80a   : > { %v3516_v51 = vpop.eup %3515 }
 0x80b   : > { %v1942_v52 = vmul.f32 %v3516_v51, %v1923_v15  ;;  %v1998_v15 = vmax.f32 %v1997_v17, %v1957_v12 }
 0x80c   : > { %v3518_v24 = vpop.eup %3517 }
 0x80d   : > { %v1943_v38 = vadd.f32 %v1942_v52, %v4750_v53  ;;  %v1945_v54 = vsub.f32 1.0, %v3518_v24  ;;  %v1947_v32 = vmul.f32 %v3518_v24, %v4467_v11  ;;  %v1999_v51 = vmax.f32 %v1998_v15, %v1960_v28  ;;  %v1966_v52 = vpop.xlane.xlu1 %1965 }
 0x80f   : > { %3519 = vtanh.f32 %v1943_v38  ;;  %v2000_v53 = vmax.f32 %v1999_v51, %v1963_v14  ;;  %v1975_v38 = vpop.xlane.xlu0 %1974 }
 0x811   : > { %v2001_v24 = vmax.f32 %v2000_v53, %v1966_v52 }
 0x81c   : > { %v3520_v16 = vpop.eup %3519 }
 0x81d   : > { %v1946_v61 = vmul.f32 %v3520_v16, %v1945_v54  ;;  %v2002_v54 = vmax.f32 %v2001_v24, %v1969_v50 }
 0x81f   : > { %v4492_v3 = vadd.f32 %v1947_v32, %v1946_v61  ;;  %v1981_v32 = vpop.xlane.xlu0 %1980 }
 0x821   : > { %v1970_v39 = vmul.f32 %v4069_v37, %v4492_v3  ;;  %v1994_v35 = vmul.f32 %v4475_v22, %v4492_v3  ;;  %v3389_v37 = vld [vmem:[%s4718_s13 + $0x78] sm:$0xff]  }
 0x822   : > { %3045 = vmatprep.subr.bf16.mxu0 %v3389_v37 }
 0x823   : > { %1971 = vadd.xlane.f32.xlu1 %v1970_v39  ;;  %3046 = vmatpush3.bf16.msra.mxu0 %v3390_v26 }
 0x824   : > { %3047 = vmatprep.subr.bf16.mxu0 %v3391_v55 }
 0x827   : > { %1977 = vadd.xlane.f32.xlu1 %v1976_v42  ;;  %3048 = vmatpush3.bf16.msra.mxu0 %v3392_v30 }
 0x828   : > { %3049 = vmatprep.subr.bf16.mxu0 %v3393_v31 }
 0x82b   : > { %1983 = vadd.xlane.f32.xlu1 %v1982_v45  ;;  %3050 = vmatpush3.bf16.msra.mxu0 %v3394_v41 }
 0x82c   : > { %3051 = vmatprep.subr.bf16.mxu0 %v3395_v43  ;;  %v1987_v43 = vpop.xlane.xlu0 %1986 }
 0x82f   : > { %1989 = vadd.xlane.f32.xlu1 %v1988_v5  ;;  %3052 = vmatpush3.bf16.msra.mxu0 %v3396_v56 }
 0x830   : > { %3053 = vmatprep.subr.bf16.mxu0 %v3397_v48  ;;  %v1993_v7 = vpop.xlane.xlu0 %1992 }
 0x833   : > { %1995 = vadd.xlane.f32.xlu1 %v1994_v35  ;;  %3054 = vmatpush3.bf16.msra.mxu0 %v3399_v57 }
 0x834   : > { %3055 = vmatprep.subr.bf16.mxu0 %v3401_v60 }
 0x837   : > { %3056 = vmatpush3.bf16.msra.mxu0 %v3403_v59 }
 0x838   : > { %3057 = vmatprep.subr.bf16.mxu0 %v3405_v23 }
 0x83b   : > { %3058 = vmatpush3.bf16.msra.mxu0 %v3407_v49 }
 0x83c   : > { %3059 = vmatprep.subr.bf16.mxu0 %v3409_v27 }
 0x83f   : > { %3060 = vmatpush3.bf16.msra.mxu0 %v3411_v36 }
 0x840   : > { %3089 = vmatprep.subr.bf16.mxu0 %v3414_v63 }
 0x8ac   : > { %v1972_v16 = vpop.xlane.xlu1 %1971 }
 0x8ad   : > { %v2003_v61 = vmax.f32 %v2002_v54, %v1972_v16 }
 0x8af   : > { %v2004_v39 = vsub.f32 %v1951_v9, %v2003_v61  ;;  %v2007_v42 = vsub.f32 %v1954_v10, %v2003_v61  ;;  %v2010_v45 = vsub.f32 %v1957_v12, %v2003_v61  ;;  %v2013_v5 = vsub.f32 %v1960_v28, %v2003_v61 }
 0x8b0   : > { %v1978_v35 = vpop.xlane.xlu1 %1977  ;;  %v2016_v31 = vsub.f32 %v1963_v14, %v2003_v61  ;;  %v2019_v46 = vsub.f32 %v1966_v52, %v2003_v61  ;;  %v2022_v29 = vsub.f32 %v1969_v50, %v2003_v61  ;;  %v2025_v60 = vsub.f32 %v1972_v16, %v2003_v61 }
 0x8b1   : > { %v2005_v37 = vmul.f32 1.442695, %v2004_v39  ;;  %v2008_v26 = vmul.f32 1.442695, %v2007_v42  ;;  %v2044_v55 = vmax.f32 %v1975_v38, %v1978_v35  ;;  %v2011_v30 = vmul.f32 1.442695, %v2010_v45 }
 0x8b2   : > { %v2014_v56 = vmul.f32 1.442695, %v2013_v5  ;;  %v2017_v18 = vmul.f32 1.442695, %v2016_v31  ;;  %v2020_v21 = vmul.f32 1.442695, %v2019_v46 }
 0x8b3   : > { %3521 = vpow2.f32 %v2005_v37  ;;  %v2045_v41 = vmax.f32 %v2044_v55, %v1981_v32  ;;  %v2023_v23 = vmul.f32 1.442695, %v2022_v29  ;;  %v2026_v49 = vmul.f32 1.442695, %v2025_v60 }
 0x8b4   : > { %3523 = vpow2.f32 %v2008_v26  ;;  %v1984_v47 = vpop.xlane.xlu1 %1983  ;;  %v2097_v60 = vadd.f32 %v4117_v44, %v4067_v34 }
 0x8b5   : > { %v2046_v48 = vmax.f32 %v2045_v41, %v1984_v47  ;;  %3525 = vpow2.f32 %v2011_v30 }
 0x8b6   : > { %3527 = vpow2.f32 %v2014_v56 }
 0x8b7   : > { %v2047_v57 = vmax.f32 %v2046_v48, %v1987_v43  ;;  %3529 = vpow2.f32 %v2017_v18 }
 0x8b8   : > { %v1990_v33 = vpop.xlane.xlu1 %1989  ;;  %3531 = vpow2.f32 %v2020_v21 }
 0x8b9   : > { %v2048_v59 = vmax.f32 %v2047_v57, %v1990_v33  ;;  %3533 = vpow2.f32 %v2023_v23 }
 0x8ba   : > { %3535 = vpow2.f32 %v2026_v49 }
 0x8bb   : > { %v2049_v58 = vmax.f32 %v2048_v59, %v1993_v7 }
 0x8bc   : > { %v1996_v27 = vpop.xlane.xlu1 %1995 }
 0x8bd   : > { %v2050_v36 = vmax.f32 %v2049_v58, %v1996_v27  ;;  %v2102_v58 = vadd.f32 %v2097_v60, %v4165_v20  ;;  %v3424_v60 = vld [vmem:[%s4718_s13 + $0x128] sm:$0xff]  }
 0x8bf   : > { %v2051_v62 = vsub.f32 %v1975_v38, %v2050_v36  ;;  %v2054_v63 = vsub.f32 %v1978_v35, %v2050_v36  ;;  %v2057_v13 = vsub.f32 %v1981_v32, %v2050_v36  ;;  %v2060_v0 = vsub.f32 %v1984_v47, %v2050_v36 }
 0x8c0   : > { %v3522_v25 = vpop.eup %3521  ;;  %v2063_v10 = vsub.f32 %v1987_v43, %v2050_v36  ;;  %v2066_v28 = vsub.f32 %v1990_v33, %v2050_v36  ;;  %v2069_v52 = vsub.f32 %v1993_v7, %v2050_v36  ;;  %v2072_v38 = vsub.f32 %v1996_v27, %v2050_v36 }
 0x8c1   : > { %v3524_v1 = vpop.eup %3523  ;;  %v2052_v40 = vmul.f32 1.442695, %v2051_v62  ;;  %v2055_v19 = vmul.f32 1.442695, %v2054_v63  ;;  %v2058_v9 = vmul.f32 1.442695, %v2057_v13  ;;  %v2107_v62 = vadd.f32 %v2102_v58, %v4248_v2 }
 0x8c2   : > { %v2028_v8 = vadd.f32 %v3524_v1, %v3522_v25  ;;  %v3526_v12 = vpop.eup %3525  ;;  %v2061_v17 = vmul.f32 1.442695, %v2060_v0  ;;  %v2064_v51 = vmul.f32 1.442695, %v2063_v10  ;;  %v2067_v54 = vmul.f32 1.442695, %v2066_v28 }
 0x8c3   : > { %3537 = vpow2.f32 %v2052_v40  ;;  %v3528_v50 = vpop.eup %3527  ;;  %v2070_v32 = vmul.f32 1.442695, %v2069_v52  ;;  %v2073_v42 = vmul.f32 1.442695, %v2072_v38  ;;  %v2112_v40 = vadd.f32 %v2107_v62, %v4341_v4  ;;  %v3434_v62 = vld [vmem:[%s4718_s13 + $0x108] sm:$0xff]  }
 0x8c4   : > { %v2029_v14 = vadd.f32 %v3526_v12, %v2028_v8  ;;  %3539 = vpow2.f32 %v2055_v19  ;;  %v3530_v53 = vpop.eup %3529 }
 0x8c5   : > { %3541 = vpow2.f32 %v2058_v9  ;;  %v3532_v16 = vpop.eup %3531  ;;  %v2117_v8 = vadd.f32 %v2112_v40, %v4414_v6 }
 0x8c6   : > { %v2030_v15 = vadd.f32 %v3528_v50, %v2029_v14  ;;  %3543 = vpow2.f32 %v2061_v17  ;;  %v3534_v39 = vpop.eup %3533 }
 0x8c7   : > { %3545 = vpow2.f32 %v2064_v51  ;;  %v3536_v5 = vpop.eup %3535  ;;  %v2122_v14 = vadd.f32 %v2117_v8, %v4467_v11 }
 0x8c8   : > { %v2031_v24 = vadd.f32 %v3530_v53, %v2030_v15  ;;  %3547 = vpow2.f32 %v2067_v54 }
 0x8c9   : > { %3549 = vpow2.f32 %v2070_v32  ;;  %v2127_v15 = vadd.f32 %v2122_v14, %v4492_v3 }
 0x8ca   : > { %v2032_v61 = vadd.f32 %v3532_v16, %v2031_v24  ;;  %3551 = vpow2.f32 %v2073_v42 }
 0x8cb   : > { %v2128_v54 = vmul.f32 0.125, %v2127_v15 }
 0x8cc   : > { %v2033_v45 = vadd.f32 %v3534_v39, %v2032_v61 }
 0x8ce   : > { %v2034_v35 = vadd.f32 %v3536_v5, %v2033_v45  ;;  %v3416_v45 = vld [vmem:[%s4718_s13 + $0x138] sm:$0xff]  }
 0x8d0   : > { %v3538_v37 = vpop.eup %3537  ;;  %3553 = vrcp.f32 %v2034_v35 }
 0x8d1   : > { %v3540_v26 = vpop.eup %3539 }
 0x8d2   : > { %v2075_v55 = vadd.f32 %v3540_v26, %v3538_v37  ;;  %v3542_v30 = vpop.eup %3541 }
 0x8d3   : > { %v3544_v41 = vpop.eup %3543 }
 0x8d4   : > { %v2076_v31 = vadd.f32 %v3542_v30, %v2075_v55  ;;  %v3546_v56 = vpop.eup %3545 }
 0x8d5   : > { %v3548_v47 = vpop.eup %3547 }
 0x8d6   : > { %v2077_v43 = vadd.f32 %v3544_v41, %v2076_v31  ;;  %v3550_v18 = vpop.eup %3549  ;;  %v2129_v31 = vpack.c.bf16 %v4492_v3, %v4492_v3 }
 0x8d7   : > { %v4603_v29 = vpop.eup %3551 }
 0x8d8   : > { %v2078_v46 = vadd.f32 %v3546_v56, %v2077_v43  ;;  %v3418_v43 = vld [vmem:[%s4718_s13 + $0x170] sm:$0xff]  }
 0x8da   : > { %v2079_v48 = vadd.f32 %v3548_v47, %v2078_v46 }
 0x8dc   : > { %v2080_v57 = vadd.f32 %v3550_v18, %v2079_v48 }
 0x8dd   : > { %v3554_v21 = vpop.eup %3553 }
 0x8de   : > { %v2081_v33 = vadd.f32 %v4603_v29, %v2080_v57  ;;  %v2036_v59 = vmul.f32 %v3554_v21, %v3522_v25  ;;  %v2037_v7 = vmul.f32 %v3554_v21, %v3524_v1  ;;  %v2038_v23 = vmul.f32 %v3554_v21, %v3526_v12  ;;  %v3422_v57 = vld [vmem:[%s4718_s13 + $0x168] sm:$0xff]  }
 0x8df   : > { %v2039_v49 = vmul.f32 %v3554_v21, %v3528_v50  ;;  %v2040_v63 = vmul.f32 %v3554_v21, %v3530_v53  ;;  %v2041_v19 = vmul.f32 %v3554_v21, %v3532_v16  ;;  %v2042_v9 = vmul.f32 %v3554_v21, %v3534_v39 }
 0x8e0   : > { %3555 = vrcp.f32 %v2081_v33  ;;  %v2091_v27 = vmul.f32 %v2036_v59, %v4067_v34  ;;  %v2093_v36 = vmul.f32 %v2037_v7, %v4117_v44  ;;  %v2098_v0 = vmul.f32 %v2038_v23, %v4165_v20 }
 0x8e1   : > { %v2103_v1 = vmul.f32 %v2039_v49, %v4248_v2  ;;  %v2108_v12 = vmul.f32 %v2040_v63, %v4341_v4  ;;  %v2043_v17 = vmul.f32 %v3554_v21, %v3536_v5  ;;  %v2113_v50 = vmul.f32 %v2041_v19, %v4414_v6  ;;  %v3435_v63 = vld [vmem:[%s4718_s13 + $0x140] sm:$0xff]  }
 0x8e2   : > { %v2094_v13 = vadd.f32 %v2093_v36, %v2091_v27  ;;  %v2118_v52 = vmul.f32 %v2042_v9, %v4467_v11  ;;  %v3431_v27 = vld [vmem:[%s4718_s13 + $0x150] sm:$0xff]   ;;  %v3433_v36 = vld [vmem:[%s4718_s13 + $0x148] sm:$0xff]  }
 0x8e3   : > { %v2123_v38 = vmul.f32 %v2043_v17, %v4492_v3  ;;  %v2901_v17 = vld [vmem:[%s4719_s14] ss:$0 sm:$0xff] }
 0x8e4   : > { %v2099_v25 = vadd.f32 %v2098_v0, %v2094_v13  ;;  %v3436_v13 = vld [vmem:[%s4718_s13 + $0x100] sm:$0xff]   ;;  %v2133_v0 = vpack.c.bf16 %v4475_v22, %v4475_v22 }
 0x8e6   : > { %v2104_v10 = vadd.f32 %v2103_v1, %v2099_v25 }
 0x8e8   : > { %v2109_v28 = vadd.f32 %v2108_v12, %v2104_v10 }
 0x8ea   : > { %v2114_v51 = vadd.f32 %v2113_v50, %v2109_v28 }
 0x8ec   : > { %v2119_v53 = vadd.f32 %v2118_v52, %v2114_v51 }
 0x8ed   : > { %v3556_v24 = vpop.eup %3555 }
 0x8ee   : > { %v2124_v16 = vadd.f32 %v2123_v38, %v2119_v53  ;;  %v2083_v61 = vmul.f32 %v3556_v24, %v3538_v37  ;;  %v2084_v32 = vmul.f32 %v3556_v24, %v3540_v26  ;;  %v2085_v39 = vmul.f32 %v3556_v24, %v3542_v30 }
 0x8ef   : > { %v2086_v5 = vmul.f32 %v3556_v24, %v3544_v41  ;;  %v2134_v37 = vpack.c.bf16 %v2128_v54, %v2128_v54  ;;  %v2087_v26 = vmul.f32 %v3556_v24, %v3546_v56  ;;  %v2089_v56 = vmul.f32 %v3556_v24, %v3550_v18 }
 0x8f0   : > { %v2130_v42 = vpack.c.bf16 %v2124_v16, %v2124_v16  ;;  %v2092_v35 = vmul.f32 %v2083_v61, %v4067_v34  ;;  %v2095_v55 = vmul.f32 %v2084_v32, %v4117_v44  ;;  %v2100_v46 = vmul.f32 %v2085_v39, %v4165_v20  ;;  %v3420_v34 = vld [vmem:[%s4718_s13 + $0x130] sm:$0xff]  }
 0x8f1   : > { %v2088_v44 = vmul.f32 %v3556_v24, %v3548_v47  ;;  %v2105_v48 = vmul.f32 %v2086_v5, %v4248_v2  ;;  %v2110_v20 = vmul.f32 %v2087_v26, %v4341_v4  ;;  %v2090_v33 = vmul.f32 %v3556_v24, %v4603_v29  ;;  %v3426_v2 = vld [vmem:[%s4718_s13 + $0x160] sm:$0xff]  }
 0x8f2   : > { %2558 = vmatprep.mubr.bf16.mxu0 %v2130_v42  ;;  %v2096_v30 = vadd.f32 %v2095_v55, %v2092_v35  ;;  %v2120_v18 = vmul.f32 %v2089_v56, %v4467_v11  ;;  %v3428_v4 = vld [vmem:[%s4718_s13 + $0x120] sm:$0xff]   ;;  %v3430_v11 = vld [vmem:[%s4718_s13 + $0x118] sm:$0xff]  }
 0x8f3   : > { %2559 = vmatmul.mubr.bf16.vlgmr.msra.gmra.mxu0 %v2129_v31  ;;  %v2115_v59 = vmul.f32 %v2088_v44, %v4414_v6  ;;  %v2125_v58 = vmul.f32 %v2090_v33, %v4492_v3  ;;  %v3429_v6 = vld [vmem:[%s4718_s13 + $0x158] sm:$0xff]   ;;  %v3432_v3 = vld [vmem:[%s4718_s13 + $0x110] sm:$0xff]  }
 0x8f4   : > { %3090 = vmatpush3.bf16.msra.mxu0 %v3416_v45  ;;  %2638 = vmatprep.mubr.bf16.mxu0 %v2134_v37  ;;  %v2101_v41 = vadd.f32 %v2100_v46, %v2096_v30 }
 0x8f5   : > { %3091 = vmatprep.subr.bf16.mxu0 %v3418_v43 }
 0x8f6   : > { %v2106_v21 = vadd.f32 %v2105_v48, %v2101_v41 }
 0x8f8   : > { %3092 = vmatpush3.bf16.msra.mxu0 %v3420_v34  ;;  %v2111_v47 = vadd.f32 %v2110_v20, %v2106_v21 }
 0x8f9   : > { %3093 = vmatprep.subr.bf16.mxu0 %v3422_v57 }
 0x8fa   : > { %v2116_v7 = vadd.f32 %v2115_v59, %v2111_v47 }
 0x8fc   : > { %3094 = vmatpush3.bf16.msra.mxu0 %v3424_v60  ;;  %v2121_v23 = vadd.f32 %v2120_v18, %v2116_v7 }
 0x8fd   : > { %3095 = vmatprep.subr.bf16.mxu0 %v3426_v2 }
 0x8fe   : > { %v2126_v29 = vadd.f32 %v2125_v58, %v2121_v23 }
 0x900   : > { %3096 = vmatpush3.bf16.msra.mxu0 %v3428_v4  ;;  %v2131_v49 = vpack.c.bf16 %v2126_v29, %v2126_v29 }
 0x901   : > { %3097 = vmatprep.subr.bf16.mxu0 %v3429_v6 }
 0x902   : > { %2599 = vmatmul.mubr.bf16.vlgmr.msra.gmra.mxu1 %v2131_v49 }
 0x904   : > { %3098 = vmatpush3.bf16.msra.mxu0 %v3430_v11 }
 0x905   : > { %3099 = vmatprep.subr.bf16.mxu0 %v3431_v27 }
 0x908   : > { %3100 = vmatpush3.bf16.msra.mxu0 %v3432_v3 }
 0x909   : > { %3101 = vmatprep.subr.bf16.mxu0 %v3433_v36 }
 0x90c   : > { %3102 = vmatpush3.bf16.msra.mxu0 %v3434_v62 }
 0x90d   : > { %3103 = vmatprep.subr.bf16.mxu0 %v3435_v63 }
 0x910   : > { %3104 = vmatpush3.bf16.msra.mxu0 %v3436_v13 }
 0x913   : > { %2639 = vmatmul.mubr.bf16.vlgmr.msra.gmra.mxu0 %v2133_v0 }
 0x9b3   : > { %v3061_v40 = vpop.f32.mrf.mxu0 }
 0x9b5   : > { %v3062_v19 = vpop.f32.mrf.mxu0 }
 0x9b6   : > { %v3063_v14 = vadd.f32 %v3062_v19, %v3061_v40 }
 0x9b7   : > { %v3064_v25 = vpop.f32.mrf.mxu0 }
 0x9b8   : > { %v2561_v15 = vadd.f32 %v3063_v14, %v2901_v17 }
 0x9b9   : > { %v3065_v1 = vpop.f32.mrf.mxu0 }
 0x9c2   : > { %v3083_v8 = vpop.f32.mrf.mxu1 }
 0x9c4   : > { %v3084_v9 = vpop.f32.mrf.mxu1 }
 0x9c5   : > { %v3085_v28 = vadd.f32 %v3084_v9, %v3083_v8 }
 0x9c6   : > { %v3086_v10 = vpop.f32.mrf.mxu1 }
 0x9c7   : > { %v2601_v52 = vadd.f32 %v3085_v28, %v2561_v15 }
 0x9c8   : > { %v3087_v12 = vpop.f32.mrf.mxu1 }
 0x9d3   : > { %v3105_v50 = vpop.f32.mrf.mxu0 }
 0x9d5   : > { %v3106_v51 = vpop.f32.mrf.mxu0 }
 0x9d6   : > { %v3107_v22 = vadd.f32 %v3106_v51, %v3105_v50 }
 0x9d7   : > { %v3108_v53 = vpop.f32.mrf.mxu0 }
 0x9d8   : > { %v2641_v38 = vadd.f32 %v3107_v22, %v2601_v52 }
 0x9d9   : > { %v3109_v24 = vpop.f32.mrf.mxu0 }
 0x9da   : > { %3557 = vtanh.f32 %v2641_v38 }
 0x9e7   : > { %v3558_v54 = vpop.eup %3557 }
 0x9e8   : > { %2647 = vst.msk [vmem:[#allocation3] sm:$0xff] %vm612_vm0, %v3558_v54 }
 0x9e9 PF: > { %v3583_v16 = vld [vmem:[%s3705_s17 + $0x38] sm:$0xff]   ;;  %v3602_v61 = vmov 0.0   ;;  %vm2706_vm2 = vcmask 261120   ;;  %v3584_v39 = vld [vmem:[%s3705_s17 + $0x30] sm:$0xff]   ;;  %vm3603_vm3 = vmmov 0   ;;  %v3585_v45 = vld [vmem:[%s3705_s17 + $0x28] sm:$0xff]  }
 0x9ea   : > { %3308 = vmatprep.subr.bf16.mxu0 %v3602_v61  ;;  %v2732_v32 = vsel %vm2706_vm2, %v3583_v16, 0  ;;  %v2729_v42 = vsel %vm2706_vm2, %v3584_v39, 0  ;;  %3324 = vmatprep.mubr.msk.bf16.mxu0 %vm3603_vm3, %v3602_v61  ;;  %v2726_v5 = vsel %vm2706_vm2, %v3585_v45, 0  ;;  %v3586_v35 = vld [vmem:[%s3705_s17 + $0x20] sm:$0xff]   ;;  %v3587_v31 = vld [vmem:[%s3705_s17 + $0x18] sm:$0xff]   ;;  %v3588_v37 = vld [vmem:[%s3705_s17 + $0x10] sm:$0xff]  }
 0x9eb   : > { %3309 = vmatpush3.bf16.xpose.msra.mxu0 %v2732_v32  ;;  %v2723_v55 = vsel %vm2706_vm2, %v3586_v35, 0  ;;  %v2720_v43 = vsel %vm2706_vm2, %v3587_v31, 0  ;;  %v2717_v26 = vsel %vm2706_vm2, %v3588_v37, 0  ;;  %v3589_v30 = vld [vmem:[%s3705_s17 + $0x8] sm:$0xff]   ;;  %v3590_v34 = vld [vmem:[%s3705_s17] sm:$0xff]  }
 0x9ec   : > { %3310 = vmatprep.subr.bf16.mxu0 %v3602_v61  ;;  %v2714_v46 = vsel %vm2706_vm2, %v3589_v30, 0  ;;  %v2711_v44 = vsel %vm2706_vm2, %v3590_v34, 0 }
 0x9ef   : > { %v2664_v41 = vld [vmem:[#allocation3] sm:$0xff] }
 0x9f0   : > { %v2665_v48 = vpack.c.bf16 %v2664_v41, %v2664_v41 }
 0x9f3   : > { %3311 = vmatpush3.bf16.xpose.msra.mxu0 %v2729_v42 }
 0x9f4   : > { %3312 = vmatprep.subr.bf16.mxu0 %v3602_v61 }
 0x9fb   : > { %3313 = vmatpush3.bf16.xpose.msra.mxu0 %v2726_v5 }
 0x9fc   : > { %3314 = vmatprep.subr.bf16.mxu0 %v3602_v61 }
 0xa03   : > { %3315 = vmatpush3.bf16.xpose.msra.mxu0 %v2723_v55 }
 0xa04   : > { %3316 = vmatprep.subr.bf16.mxu0 %v3602_v61 }
 0xa0b   : > { %3317 = vmatpush3.bf16.xpose.msra.mxu0 %v2720_v43 }
 0xa0c   : > { %3318 = vmatprep.subr.bf16.mxu0 %v3602_v61 }
 0xa13   : > { %3319 = vmatpush3.bf16.xpose.msra.mxu0 %v2717_v26 }
 0xa14   : > { %3320 = vmatprep.subr.bf16.mxu0 %v3602_v61 }
 0xa1b   : > { %3321 = vmatpush3.bf16.xpose.msra.mxu0 %v2714_v46 }
 0xa1c   : > { %3322 = vmatprep.subr.bf16.mxu0 %v3602_v61 }
 0xa23   : > { %3323 = vmatpush3.bf16.xpose.msra.mxu0 %v2711_v44 }
 0xa2a   : > { %3325 = vmatmul.mubr.msk.bf16.vlgmr.msra.gmra.mxu0 %vm2706_vm2, %v2665_v48 }
 0xaea   : > { %v2768_v57 = vpop.f32.mrf.mxu0 }
 0xaeb   : > { %2774 = vst [vmem:[%s3700_s29] sm:$0xff] %v2768_v57 }
 0xaec   : > { %v3326_v56 = vpop.f32.mrf.mxu0 }
 0xaee   : > { %v2771_v21 = vpop.f32.mrf.mxu0 }
 0xaf0   : > { %v3327_v20 = vpop.f32.mrf.mxu0 }
 0xaf1 PF: > { %s4751_s21 = sld [smem:[#allocation4_spill]] }
 0xaf7   : > { %s26_s21 = sadd.s32 1, %s4751_s21  }
 0xaf8   : > { %p23_p6 = scmp.ge.s32.totalorder %s26_s21, 4  }
 0xafa   :  { %25 = sbr.rel (!%p23_p6) target bundleno = 2 (0x2), region = 118 }

</bundles_post_ra>
